<compile_context>
chip_gen: v7x
topology: tpu7x:2x2x1
jax: 0.10.0
libtpu: 0.0.40
codegen_flags: <defaults>
</compile_context>

<pallas_src>
import functools

import jax
import jax.numpy as jnp
from jax import lax
from jax.experimental import pallas as pl
from jax.experimental.pallas import tpu as pltpu

LANE = 128       # lane width: last dim padded to multiples of this
SUBLANE = 8      # sublane width: batch padded to multiples of this
MAX_TILE_B = 256 # batch tile (256-512 row range per review)


def _round_up(n, m):
    return ((n + m - 1) // m) * m


# ---------------------------------------------------------------------------
# Pallas kernels
# ---------------------------------------------------------------------------

def _linear_kernel(x_ref, w_ref, b_ref, o_ref, *, relu):
    """y = x @ W + b, optional ReLU. W is bf16 (In, Out); accumulate in f32."""
    x = x_ref[...].astype(jnp.bfloat16)
    y = jnp.dot(x, w_ref[...], preferred_element_type=jnp.float32) + b_ref[...]
    if relu:
        y = jnp.maximum(y, 0.0)
    o_ref[...] = y.astype(o_ref.dtype)


def _fc_res_kernel(x_ref, w1_ref, b1_ref, w2_ref, b2_ref, o_ref):
    """FC_Reslayer: h = relu(x@W1+b1); out = relu(h + h@W2+b2). Fused, no HBM
    round-trip for h."""
    x = x_ref[...].astype(jnp.bfloat16)
    h = jnp.dot(x, w1_ref[...], preferred_element_type=jnp.float32) + b1_ref[...]
    h = jnp.maximum(h, 0.0)
    y = jnp.dot(h.astype(jnp.bfloat16), w2_ref[...],
                preferred_element_type=jnp.float32) + b2_ref[...]
    o_ref[...] = jnp.maximum(h + y, 0.0).astype(o_ref.dtype)


def _attention_kernel(v_ref, a_ref, f_ref, wv_ref, bv_ref, wa_ref, ba_ref, o_ref):
    """AttentionMechanism: w_v = fc1(fused); w_a = fc2(fused);
    out = (w_v*v + w_a*a) / (sum(w_v) + sum(w_a) + eps)."""
    f = f_ref[...].astype(jnp.bfloat16)
    w_v = jnp.dot(f, wv_ref[...], preferred_element_type=jnp.float32) + bv_ref[...]
    w_a = jnp.dot(f, wa_ref[...], preferred_element_type=jnp.float32) + ba_ref[...]
    # Padded lanes of w_v/w_a are exactly zero (zero weight cols + zero bias),
    # so summing over the padded lane dim matches the unpadded semantics.
    norm = (w_v.sum(axis=1, keepdims=True)
            + w_a.sum(axis=1, keepdims=True) + 1e-10)
    o = (w_v * v_ref[...] + w_a * a_ref[...]) / norm
    o_ref[...] = o.astype(o_ref.dtype)


# ---------------------------------------------------------------------------
# Pallas wrappers (batch-tiled, weights resident)
# ---------------------------------------------------------------------------

def _grid_params(x):
    b = x.shape[0]
    tile_b = MAX_TILE_B if b >= MAX_TILE_B else b
    assert b % tile_b == 0 and tile_b % SUBLANE == 0
    return tile_b, b // tile_b


_PARALLEL = pltpu.CompilerParams(dimension_semantics=("parallel",))


def pallas_linear(x, w, b, *, relu):
    B, In = x.shape
    In_w, Out = w.shape
    assert In == In_w
    tile_b, nb = _grid_params(x)
    cost = pl.CostEstimate(
        flops=2 * B * In * Out,
        transcendentals=0,
        bytes_accessed=B * In * 4 + In * Out * 2 + Out * 4 + B * Out * 4)
    return pl.pallas_call(
        functools.partial(_linear_kernel, relu=relu),
        out_shape=jax.ShapeDtypeStruct((B, Out), jnp.float32),
        grid=(nb,),
        in_specs=[
            pl.BlockSpec((tile_b, In), lambda i: (i, 0)),
            pl.BlockSpec((In, Out), lambda i: (0, 0)),
            pl.BlockSpec((1, Out), lambda i: (0, 0)),
        ],
        out_specs=pl.BlockSpec((tile_b, Out), lambda i: (i, 0)),
        compiler_params=_PARALLEL,
        cost_estimate=cost,
    )(x, w, b)


def pallas_fc_reslayer(x, w1, b1, w2, b2):
    B, In = x.shape
    Out = w1.shape[1]
    tile_b, nb = _grid_params(x)
    cost = pl.CostEstimate(
        flops=2 * B * Out * (In + Out),
        transcendentals=0,
        bytes_accessed=(B * In * 4 + (In * Out + Out * Out) * 2
                        + 2 * Out * 4 + B * Out * 4))
    return pl.pallas_call(
        _fc_res_kernel,
        out_shape=jax.ShapeDtypeStruct((B, Out), jnp.float32),
        grid=(nb,),
        in_specs=[
            pl.BlockSpec((tile_b, In), lambda i: (i, 0)),
            pl.BlockSpec((In, Out), lambda i: (0, 0)),
            pl.BlockSpec((1, Out), lambda i: (0, 0)),
            pl.BlockSpec((Out, Out), lambda i: (0, 0)),
            pl.BlockSpec((1, Out), lambda i: (0, 0)),
        ],
        out_specs=pl.BlockSpec((tile_b, Out), lambda i: (i, 0)),
        compiler_params=_PARALLEL,
        cost_estimate=cost,
    )(x, w1, b1, w2, b2)


def pallas_attention(v, a, fused, wv, bv, wa, ba):
    B, D = v.shape
    _, F = fused.shape
    tile_b, nb = _grid_params(v)
    cost = pl.CostEstimate(
        flops=4 * B * F * D,
        transcendentals=0,
        bytes_accessed=(B * (2 * D + F) * 4 + 2 * (F * D * 2 + D * 4)
                        + B * D * 4))
    return pl.pallas_call(
        _attention_kernel,
        out_shape=jax.ShapeDtypeStruct((B, D), jnp.float32),
        grid=(nb,),
        in_specs=[
            pl.BlockSpec((tile_b, D), lambda i: (i, 0)),
            pl.BlockSpec((tile_b, D), lambda i: (i, 0)),
            pl.BlockSpec((tile_b, F), lambda i: (i, 0)),
            pl.BlockSpec((F, D), lambda i: (0, 0)),
            pl.BlockSpec((1, D), lambda i: (0, 0)),
            pl.BlockSpec((F, D), lambda i: (0, 0)),
            pl.BlockSpec((1, D), lambda i: (0, 0)),
        ],
        out_specs=pl.BlockSpec((tile_b, D), lambda i: (i, 0)),
        compiler_params=_PARALLEL,
        cost_estimate=cost,
    )(v, a, fused, wv, bv, wa, ba)


# ---------------------------------------------------------------------------
# Plain-JAX visual conv front-end (left to XLA, see TODO at top)
# ---------------------------------------------------------------------------

def _conv2d(x, p, stride, pad):
    y = lax.conv_general_dilated(
        x, p["w"], window_strides=(stride, stride),
        padding=((pad, pad), (pad, pad)),
        dimension_numbers=("NCHW", "OIHW", "NCHW"))
    return y + p["b"].reshape(1, -1, 1, 1)


def _batchnorm(x, p, eps=1e-5):
    # Inference-style BN: y = gamma * (x - mean) / sqrt(var + eps) + beta.
    scale = (p["gamma"] * lax.rsqrt(p["var"] + eps)).reshape(1, -1, 1, 1)
    return (x - p["mean"].reshape(1, -1, 1, 1)) * scale + p["beta"].reshape(1, -1, 1, 1)


def _maxpool_3x3_s2_p1(x):
    return lax.reduce_window(
        x, -jnp.inf, lax.max,
        window_dimensions=(1, 1, 3, 3), window_strides=(1, 1, 2, 2),
        padding=((0, 0), (0, 0), (1, 1), (1, 1)))


def _visual_frontend(params, x):
    x = _conv2d(x, params["conv1"], 2, 1)
    x = jnp.maximum(_batchnorm(x, params["bn1"]), 0.0)
    x = _maxpool_3x3_s2_p1(x)
    x = _conv2d(x, params["conv2"], 2, 1)
    x = jnp.maximum(_batchnorm(x, params["bn2"]), 0.0)
    x = _maxpool_3x3_s2_p1(x)
    return x.reshape(x.shape[0], -1)   # (B, 12*14*14) = (B, 2352)


# ---------------------------------------------------------------------------
# Parameter init (weights stored in (In, Out) layout; padded copies for Pallas)
# ---------------------------------------------------------------------------

def _init_linear(key, in_f, out_f):
    kw, kb = jax.random.split(key)
    bound = 1.0 / (in_f ** 0.5)
    w = jax.random.uniform(kw, (in_f, out_f), minval=-bound, maxval=bound,
                           dtype=jnp.float32)
    b = jax.random.uniform(kb, (out_f,), minval=-bound, maxval=bound,
                           dtype=jnp.float32)
    return {"w": w, "b": b}


def _init_conv(key, in_ch, out_ch, k=3):
    kw, kb = jax.random.split(key)
    bound = 1.0 / ((in_ch * k * k) ** 0.5)
    w = jax.random.uniform(kw, (out_ch, in_ch, k, k), minval=-bound,
                           maxval=bound, dtype=jnp.float32)
    b = jax.random.uniform(kb, (out_ch,), minval=-bound, maxval=bound,
                           dtype=jnp.float32)
    return {"w": w, "b": b}


def _init_bn(ch):
    return {"gamma": jnp.ones((ch,), jnp.float32),
            "beta": jnp.zeros((ch,), jnp.float32),
            "mean": jnp.zeros((ch,), jnp.float32),
            "var": jnp.ones((ch,), jnp.float32)}


def init_model_params(key, dim):
    vd, ad, cd = dim["Visual"], dim["Audio"], dim["Attention_cross"]
    ks = jax.random.split(key, 16)
    return {
        "conv1": _init_conv(ks[0], vd[0], 12),
        "bn1": _init_bn(12),
        "conv2": _init_conv(ks[1], 12, 12),
        "bn2": _init_bn(12),
        "v_fc1": _init_linear(ks[2], 14 * 14 * 12, vd[1]),
        "v_fc2": _init_linear(ks[3], vd[1], vd[2]),
        "v_fc3": _init_linear(ks[4], vd[2], vd[3]),
        "a_res1_fc1": _init_linear(ks[5], ad[0], ad[1]),
        "a_res1_fc2": _init_linear(ks[6], ad[1], ad[1]),
        "a_res2_fc1": _init_linear(ks[7], ad[1], ad[2]),
        "a_res2_fc2": _init_linear(ks[8], ad[2], ad[2]),
        "a_res3_fc1": _init_linear(ks[9], ad[2], ad[3]),
        "a_res3_fc2": _init_linear(ks[10], ad[3], ad[3]),
        "a_fc4": _init_linear(ks[11], ad[3], ad[4]),
        "concat_fc": _init_linear(ks[12], cd[0], cd[1]),
        "att_fc1": _init_linear(ks[13], cd[1], cd[2]),
        "att_fc2": _init_linear(ks[14], cd[1], cd[2]),
        "classifier": _init_linear(ks[15], cd[2], 9),
    }


def _pad_linear(p):
    """Zero-pad to lane-multiples, cast weight to bf16, bias stays f32.
    Done once at init — no per-call transposes or casts of weights."""
    in_f, out_f = p["w"].shape
    in_p, out_p = _round_up(in_f, LANE), _round_up(out_f, LANE)
    w = jnp.zeros((in_p, out_p), jnp.bfloat16).at[:in_f, :out_f].set(
        p["w"].astype(jnp.bfloat16))
    b = jnp.zeros((1, out_p), jnp.float32).at[0, :out_f].set(p["b"])
    return {"w": w, "b": b}


def pad_model_params(params):
    out = {}
    for k, p in params.items():
        if "w" in p and p["w"].ndim == 2:
            out[k] = _pad_linear(p)
        else:
            out[k] = p
    return out


# ---------------------------------------------------------------------------
# Full forward pass (Pallas path)
# ---------------------------------------------------------------------------

def forward_pallas(params, visual_x, audio_x, dim):
    vd, ad, cd = dim["Visual"], dim["Audio"], dim["Attention_cross"]
    assert cd[0] == vd[3] + ad[4]
    assert cd[2] == vd[3] == ad[4]
    B = visual_x.shape[0]

    # Visual conv front-end (plain JAX).
    v_flat = _visual_frontend(params, visual_x)          # (B, 2352)

    # Batch / lane padding, done once at the Pallas boundary.
    tile_b = MAX_TILE_B if B >= MAX_TILE_B else _round_up(B, SUBLANE)
    b_pad = _round_up(B, tile_b)

    def pad2d(t):
        b, f = t.shape
        return jnp.pad(t, ((0, b_pad - b), (0, _round_up(f, LANE) - f)))

    v = pad2d(v_flat)
    a = pad2d(audio_x.astype(jnp.float32))

    # Visual FC stack (FClayer, FClayer, Nonact_FClayer).
    v = pallas_linear(v, params["v_fc1"]["w"], params["v_fc1"]["b"], relu=True)
    v = pallas_linear(v, params["v_fc2"]["w"], params["v_fc2"]["b"], relu=True)
    v = pallas_linear(v, params["v_fc3"]["w"], params["v_fc3"]["b"], relu=False)

    # Auditory FC_Reslayer stack + Nonact_FClayer.
    a = pallas_fc_reslayer(a, params["a_res1_fc1"]["w"], params["a_res1_fc1"]["b"],
                           params["a_res1_fc2"]["w"], params["a_res1_fc2"]["b"])
    a = pallas_fc_reslayer(a, params["a_res2_fc1"]["w"], params["a_res2_fc1"]["b"],
                           params["a_res2_fc2"]["w"], params["a_res2_fc2"]["b"])
    a = pallas_fc_reslayer(a, params["a_res3_fc1"]["w"], params["a_res3_fc1"]["b"],
                           params["a_res3_fc2"]["w"], params["a_res3_fc2"]["b"])
    a = pallas_linear(a, params["a_fc4"]["w"], params["a_fc4"]["b"], relu=False)

    # Concat real feature lanes, re-pad lane-dense, then concat_fc (FClayer).
    fused = pad2d(jnp.concatenate([v[:, :vd[3]], a[:, :ad[4]]], axis=1))
    fused = pallas_linear(fused, params["concat_fc"]["w"],
                          params["concat_fc"]["b"], relu=True)

    # Attention fusion.
    fused = pallas_attention(v, a, fused,
                             params["att_fc1"]["w"], params["att_fc1"]["b"],
                             params["att_fc2"]["w"], params["att_fc2"]["b"])

    # Classifier; slice away batch/lane padding.
    out = pallas_linear(fused, params["classifier"]["w"],
                        params["classifier"]["b"], relu=False)
    return out[:B, :9]


# ---------------------------------------------------------------------------
# Pure-JAX reference (mirrors the bf16 matmul-operand casts of the kernels)
# ---------------------------------------------------------------------------

def _linear_ref(x, p, relu=False):
    y = jnp.dot(x.astype(jnp.bfloat16), p["w"].astype(jnp.bfloat16),
                preferred_element_type=jnp.float32) + p["b"]
    return jnp.maximum(y, 0.0) if relu else y


def _fc_res_ref(x, p1, p2):
    h = _linear_ref(x, p1, relu=True)
    return jnp.maximum(h + _linear_ref(h, p2), 0.0)


def forward_ref(params, visual_x, audio_x, dim):
    v = _visual_frontend(params, visual_x)
    v = _linear_ref(v, params["v_fc1"], relu=True)
    v = _linear_ref(v, params["v_fc2"], relu=True)
    v = _linear_ref(v, params["v_fc3"])
    a = _fc_res_ref(audio_x, params["a_res1_fc1"], params["a_res1_fc2"])
    a = _fc_res_ref(a, params["a_res2_fc1"], params["a_res2_fc2"])
    a = _fc_res_ref(a, params["a_res3_fc1"], params["a_res3_fc2"])
    a = _linear_ref(a, params["a_fc4"])
    fused = jnp.concatenate([v, a], axis=1)
    fused = _linear_ref(fused, params["concat_fc"], relu=True)
    w_v = _linear_ref(fused, params["att_fc1"])
    w_a = _linear_ref(fused, params["att_fc2"])
    norm = w_v.sum(axis=1, keepdims=True) + w_a.sum(axis=1, keepdims=True) + 1e-10
    fused = (w_v / norm) * v + (w_a / norm) * a
    return _linear_ref(fused, params["classifier"])


# ---------------------------------------------------------------------------

if __name__ == "__main__":
    key = jax.random.PRNGKey(0)
    # Small, mutually-consistent dims. The visual spatial size is forced to
    # 224x224 by the hard-coded 14*14*12 flatten in the original module.
    dim = {
        "Visual": [3, 64, 64, 32],
        "Audio": [16, 32, 32, 32, 32],
        "Attention_cross": [64, 48, 32],
    }
    B = 2

    k_p, k_v, k_a = jax.random.split(key, 3)
    params = init_model_params(k_p, dim)
    params_padded = pad_model_params(params)

    visual_input = jax.random.normal(k_v, (B, dim["Visual"][0], 224, 224),
                                     dtype=jnp.float32)
    auditory_input = jax.random.normal(k_a, (B, dim["Audio"][0]),
                                       dtype=jnp.float32)

    fwd = jax.jit(functools.partial(forward_pallas, dim=dim))
    out = fwd(params_padded, visual_input, auditory_input)
    jax.block_until_ready(out)

    ref = forward_ref(params, visual_input, auditory_input, dim)
    assert out.shape == (B, 9), f"bad output shape {out.shape}"
    assert jnp.allclose(out, ref, atol=2e-2, rtol=2e-2), \
        f"mismatch vs reference: max abs diff {jnp.max(jnp.abs(out - ref))}"
    print("KERNEL_OK")
</pallas_src>

<mosaic_0001>
module attributes {stable_mosaic.version = 11 : i64} {
  func.func @_linear_kernel(%arg0: i32, %arg1: memref<8x2432xf32, #tpu.memory_space<vmem>>, %arg2: memref<2432x128xbf16, #tpu.memory_space<vmem>>, %arg3: memref<1x128xf32, #tpu.memory_space<vmem>>, %arg4: memref<8x128xf32, #tpu.memory_space<vmem>>) attributes {dimension_semantics = [#tpu.dimension_semantics<parallel>], iteration_bounds = array<i64: 1>, scalar_prefetch = 0 : i64, scratch_operands = 0 : i64, tpu.core_type = #tpu.core_type<tc>, window_params = [{transform_indices = @transform_0, window_bounds = array<i64: 8, 2432>}, {pipeline_mode = #tpu.pipeline_mode<synchronous>, transform_indices = @transform_1, window_bounds = array<i64: 2432, 128>}, {pipeline_mode = #tpu.pipeline_mode<synchronous>, transform_indices = @transform_2, window_bounds = array<i64: 1, 128>}, {transform_indices = @transform_3, window_bounds = array<i64: 8, 128>}]} {
    %c0 = arith.constant 0 : index
    %c0_0 = arith.constant 0 : index
    %0 = vector.load %arg1[%c0, %c0_0] : memref<8x2432xf32, #tpu.memory_space<vmem>>, vector<8x2432xf32>
    %1 = arith.truncf %0 : vector<8x2432xf32> to vector<8x2432xbf16>
    %c0_1 = arith.constant 0 : index
    %c0_2 = arith.constant 0 : index
    %2 = vector.load %arg2[%c0_1, %c0_2] : memref<2432x128xbf16, #tpu.memory_space<vmem>>, vector<2432x128xbf16>
    %cst = arith.constant dense<0.000000e+00> : vector<8x128xf32>
    %3 = tpu.matmul %1, %2, %cst {dimension_numbers = #tpu.dot_dimension_numbers<[1], [0], [0], [1], [0, 0, 1, 1], [], []>} : vector<8x2432xbf16>, vector<2432x128xbf16>, vector<8x128xf32> -> vector<8x128xf32>
    %c0_3 = arith.constant 0 : index
    %c0_4 = arith.constant 0 : index
    %4 = vector.load %arg3[%c0_3, %c0_4] : memref<1x128xf32, #tpu.memory_space<vmem>>, vector<1x128xf32>
    %5 = vector.broadcast %4 : vector<1x128xf32> to vector<8x128xf32>
    %6 = arith.addf %3, %5 : vector<8x128xf32>
    %cst_5 = arith.constant 0.000000e+00 : f32
    %7 = vector.broadcast %cst_5 : f32 to vector<8x128xf32>
    %8 = arith.maximumf %6, %7 : vector<8x128xf32>
    %c0_6 = arith.constant 0 : index
    %c0_7 = arith.constant 0 : index
    %9 = vector.load %arg4[%c0_6, %c0_7] : memref<8x128xf32, #tpu.memory_space<vmem>>, vector<8x128xf32>
    tpu.vector_store %arg4[%c0_6, %c0_7], %8 {strides = array<i32>} : memref<8x128xf32, #tpu.memory_space<vmem>>, vector<8x128xf32>,
    return
  }
  func.func @transform_0(%arg0: i32) -> (i32, i32) {
    %c0_i32 = arith.constant 0 : i32
    %c0_i32_0 = arith.constant 0 : i32
    return %arg0, %c0_i32 : i32, i32
  }
  func.func @transform_1(%arg0: i32) -> (i32, i32) {
    %c0_i32 = arith.constant 0 : i32
    %c0_i32_0 = arith.constant 0 : i32
    %c0_i32_1 = arith.constant 0 : i32
    return %c0_i32, %c0_i32_0 : i32, i32
  }
  func.func @transform_2(%arg0: i32) -> (i32, i32) {
    %c0_i32 = arith.constant 0 : i32
    %c0_i32_0 = arith.constant 0 : i32
    %c0_i32_1 = arith.constant 0 : i32
    return %c0_i32, %c0_i32_0 : i32, i32
  }
  func.func @transform_3(%arg0: i32) -> (i32, i32) {
    %c0_i32 = arith.constant 0 : i32
    %c0_i32_0 = arith.constant 0 : i32
    return %arg0, %c0_i32 : i32, i32
  }
}

module attributes {stable_mosaic.version = 11 : i64} {
  func.func @_linear_kernel(%arg0: i32, %arg1: memref<8x128xf32, #tpu.memory_space<vmem>>, %arg2: memref<128x128xbf16, #tpu.memory_space<vmem>>, %arg3: memref<1x128xf32, #tpu.memory_space<vmem>>, %arg4: memref<8x128xf32, #tpu.memory_space<vmem>>) attributes {dimension_semantics = [#tpu.dimension_semantics<parallel>], iteration_bounds = array<i64: 1>, scalar_prefetch = 0 : i64, scratch_operands = 0 : i64, tpu.core_type = #tpu.core_type<tc>, window_params = [{transform_indices = @transform_0, window_bounds = array<i64: 8, 128>}, {pipeline_mode = #tpu.pipeline_mode<synchronous>, transform_indices = @transform_1, window_bounds = array<i64: 128, 128>}, {pipeline_mode = #tpu.pipeline_mode<synchronous>, transform_indices = @transform_2, window_bounds = array<i64: 1, 128>}, {transform_indices = @transform_3, window_bounds = array<i64: 8, 128>}]} {
    %c0 = arith.constant 0 : index
    %c0_0 = arith.constant 0 : index
    %0 = vector.load %arg1[%c0, %c0_0] : memref<8x128xf32, #tpu.memory_space<vmem>>, vector<8x128xf32>
    %1 = arith.truncf %0 : vector<8x128xf32> to vector<8x128xbf16>
    %c0_1 = arith.constant 0 : index
    %c0_2 = arith.constant 0 : index
    %2 = vector.load %arg2[%c0_1, %c0_2] : memref<128x128xbf16, #tpu.memory_space<vmem>>, vector<128x128xbf16>
    %cst = arith.constant dense<0.000000e+00> : vector<8x128xf32>
    %3 = tpu.matmul %1, %2, %cst {dimension_numbers = #tpu.dot_dimension_numbers<[1], [0], [0], [1], [0, 0, 1, 1], [], []>} : vector<8x128xbf16>, vector<128x128xbf16>, vector<8x128xf32> -> vector<8x128xf32>
    %c0_3 = arith.constant 0 : index
    %c0_4 = arith.constant 0 : index
    %4 = vector.load %arg3[%c0_3, %c0_4] : memref<1x128xf32, #tpu.memory_space<vmem>>, vector<1x128xf32>
    %5 = vector.broadcast %4 : vector<1x128xf32> to vector<8x128xf32>
    %6 = arith.addf %3, %5 : vector<8x128xf32>
    %cst_5 = arith.constant 0.000000e+00 : f32
    %7 = vector.broadcast %cst_5 : f32 to vector<8x128xf32>
    %8 = arith.maximumf %6, %7 : vector<8x128xf32>
    %c0_6 = arith.constant 0 : index
    %c0_7 = arith.constant 0 : index
    %9 = vector.load %arg4[%c0_6, %c0_7] : memref<8x128xf32, #tpu.memory_space<vmem>>, vector<8x128xf32>
    tpu.vector_store %arg4[%c0_6, %c0_7], %8 {strides = array<i32>} : memref<8x128xf32, #tpu.memory_space<vmem>>, vector<8x128xf32>,
    return
  }
  func.func @transform_0(%arg0: i32) -> (i32, i32) {
    %c0_i32 = arith.constant 0 : i32
    %c0_i32_0 = arith.constant 0 : i32
    return %arg0, %c0_i32 : i32, i32
  }
  func.func @transform_1(%arg0: i32) -> (i32, i32) {
    %c0_i32 = arith.constant 0 : i32
    %c0_i32_0 = arith.constant 0 : i32
    %c0_i32_1 = arith.constant 0 : i32
    return %c0_i32, %c0_i32_0 : i32, i32
  }
  func.func @transform_2(%arg0: i32) -> (i32, i32) {
    %c0_i32 = arith.constant 0 : i32
    %c0_i32_0 = arith.constant 0 : i32
    %c0_i32_1 = arith.constant 0 : i32
    return %c0_i32, %c0_i32_0 : i32, i32
  }
  func.func @transform_3(%arg0: i32) -> (i32, i32) {
    %c0_i32 = arith.constant 0 : i32
    %c0_i32_0 = arith.constant 0 : i32
    return %arg0, %c0_i32 : i32, i32
  }
}

module attributes {stable_mosaic.version = 11 : i64} {
  func.func @_linear_kernel(%arg0: i32, %arg1: memref<8x128xf32, #tpu.memory_space<vmem>>, %arg2: memref<128x128xbf16, #tpu.memory_space<vmem>>, %arg3: memref<1x128xf32, #tpu.memory_space<vmem>>, %arg4: memref<8x128xf32, #tpu.memory_space<vmem>>) attributes {dimension_semantics = [#tpu.dimension_semantics<parallel>], iteration_bounds = array<i64: 1>, scalar_prefetch = 0 : i64, scratch_operands = 0 : i64, tpu.core_type = #tpu.core_type<tc>, window_params = [{transform_indices = @transform_0, window_bounds = array<i64: 8, 128>}, {pipeline_mode = #tpu.pipeline_mode<synchronous>, transform_indices = @transform_1, window_bounds = array<i64: 128, 128>}, {pipeline_mode = #tpu.pipeline_mode<synchronous>, transform_indices = @transform_2, window_bounds = array<i64: 1, 128>}, {transform_indices = @transform_3, window_bounds = array<i64: 8, 128>}]} {
    %c0 = arith.constant 0 : index
    %c0_0 = arith.constant 0 : index
    %0 = vector.load %arg1[%c0, %c0_0] : memref<8x128xf32, #tpu.memory_space<vmem>>, vector<8x128xf32>
    %1 = arith.truncf %0 : vector<8x128xf32> to vector<8x128xbf16>
    %c0_1 = arith.constant 0 : index
    %c0_2 = arith.constant 0 : index
    %2 = vector.load %arg2[%c0_1, %c0_2] : memref<128x128xbf16, #tpu.memory_space<vmem>>, vector<128x128xbf16>
    %cst = arith.constant dense<0.000000e+00> : vector<8x128xf32>
    %3 = tpu.matmul %1, %2, %cst {dimension_numbers = #tpu.dot_dimension_numbers<[1], [0], [0], [1], [0, 0, 1, 1], [], []>} : vector<8x128xbf16>, vector<128x128xbf16>, vector<8x128xf32> -> vector<8x128xf32>
    %c0_3 = arith.constant 0 : index
    %c0_4 = arith.constant 0 : index
    %4 = vector.load %arg3[%c0_3, %c0_4] : memref<1x128xf32, #tpu.memory_space<vmem>>, vector<1x128xf32>
    %5 = vector.broadcast %4 : vector<1x128xf32> to vector<8x128xf32>
    %6 = arith.addf %3, %5 : vector<8x128xf32>
    %c0_5 = arith.constant 0 : index
    %c0_6 = arith.constant 0 : index
    %7 = vector.load %arg4[%c0_5, %c0_6] : memref<8x128xf32, #tpu.memory_space<vmem>>, vector<8x128xf32>
    tpu.vector_store %arg4[%c0_5, %c0_6], %6 {strides = array<i32>} : memref<8x128xf32, #tpu.memory_space<vmem>>, vector<8x128xf32>,
    return
  }
  func.func @transform_0(%arg0: i32) -> (i32, i32) {
    %c0_i32 = arith.constant 0 : i32
    %c0_i32_0 = arith.constant 0 : i32
    return %arg0, %c0_i32 : i32, i32
  }
  func.func @transform_1(%arg0: i32) -> (i32, i32) {
    %c0_i32 = arith.constant 0 : i32
    %c0_i32_0 = arith.constant 0 : i32
    %c0_i32_1 = arith.constant 0 : i32
    return %c0_i32, %c0_i32_0 : i32, i32
  }
  func.func @transform_2(%arg0: i32) -> (i32, i32) {
    %c0_i32 = arith.constant 0 : i32
    %c0_i32_0 = arith.constant 0 : i32
    %c0_i32_1 = arith.constant 0 : i32
    return %c0_i32, %c0_i32_0 : i32, i32
  }
  func.func @transform_3(%arg0: i32) -> (i32, i32) {
    %c0_i32 = arith.constant 0 : i32
    %c0_i32_0 = arith.constant 0 : i32
    return %arg0, %c0_i32 : i32, i32
  }
}

module attributes {stable_mosaic.version = 11 : i64} {
  func.func @_fc_res_kernel(%arg0: i32, %arg1: memref<8x128xf32, #tpu.memory_space<vmem>>, %arg2: memref<128x128xbf16, #tpu.memory_space<vmem>>, %arg3: memref<1x128xf32, #tpu.memory_space<vmem>>, %arg4: memref<128x128xbf16, #tpu.memory_space<vmem>>, %arg5: memref<1x128xf32, #tpu.memory_space<vmem>>, %arg6: memref<8x128xf32, #tpu.memory_space<vmem>>) attributes {dimension_semantics = [#tpu.dimension_semantics<parallel>], iteration_bounds = array<i64: 1>, scalar_prefetch = 0 : i64, scratch_operands = 0 : i64, tpu.core_type = #tpu.core_type<tc>, window_params = [{transform_indices = @transform_0, window_bounds = array<i64: 8, 128>}, {pipeline_mode = #tpu.pipeline_mode<synchronous>, transform_indices = @transform_1, window_bounds = array<i64: 128, 128>}, {pipeline_mode = #tpu.pipeline_mode<synchronous>, transform_indices = @transform_2, window_bounds = array<i64: 1, 128>}, {pipeline_mode = #tpu.pipeline_mode<synchronous>, transform_indices = @transform_3, window_bounds = array<i64: 128, 128>}, {pipeline_mode = #tpu.pipeline_mode<synchronous>, transform_indices = @transform_4, window_bounds = array<i64: 1, 128>}, {transform_indices = @transform_5, window_bounds = array<i64: 8, 128>}]} {
    %c0 = arith.constant 0 : index
    %c0_0 = arith.constant 0 : index
    %0 = vector.load %arg1[%c0, %c0_0] : memref<8x128xf32, #tpu.memory_space<vmem>>, vector<8x128xf32>
    %1 = arith.truncf %0 : vector<8x128xf32> to vector<8x128xbf16>
    %c0_1 = arith.constant 0 : index
    %c0_2 = arith.constant 0 : index
    %2 = vector.load %arg2[%c0_1, %c0_2] : memref<128x128xbf16, #tpu.memory_space<vmem>>, vector<128x128xbf16>
    %cst = arith.constant dense<0.000000e+00> : vector<8x128xf32>
    %3 = tpu.matmul %1, %2, %cst {dimension_numbers = #tpu.dot_dimension_numbers<[1], [0], [0], [1], [0, 0, 1, 1], [], []>} : vector<8x128xbf16>, vector<128x128xbf16>, vector<8x128xf32> -> vector<8x128xf32>
    %c0_3 = arith.constant 0 : index
    %c0_4 = arith.constant 0 : index
    %4 = vector.load %arg3[%c0_3, %c0_4] : memref<1x128xf32, #tpu.memory_space<vmem>>, vector<1x128xf32>
    %5 = vector.broadcast %4 : vector<1x128xf32> to vector<8x128xf32>
    %6 = arith.addf %3, %5 : vector<8x128xf32>
    %cst_5 = arith.constant 0.000000e+00 : f32
    %7 = vector.broadcast %cst_5 : f32 to vector<8x128xf32>
    %8 = arith.maximumf %6, %7 : vector<8x128xf32>
    %9 = arith.truncf %8 : vector<8x128xf32> to vector<8x128xbf16>
    %c0_6 = arith.constant 0 : index
    %c0_7 = arith.constant 0 : index
    %10 = vector.load %arg4[%c0_6, %c0_7] : memref<128x128xbf16, #tpu.memory_space<vmem>>, vector<128x128xbf16>
    %cst_8 = arith.constant dense<0.000000e+00> : vector<8x128xf32>
    %11 = tpu.matmul %9, %10, %cst_8 {dimension_numbers = #tpu.dot_dimension_numbers<[1], [0], [0], [1], [0, 0, 1, 1], [], []>} : vector<8x128xbf16>, vector<128x128xbf16>, vector<8x128xf32> -> vector<8x128xf32>
    %c0_9 = arith.constant 0 : index
    %c0_10 = arith.constant 0 : index
    %12 = vector.load %arg5[%c0_9, %c0_10] : memref<1x128xf32, #tpu.memory_space<vmem>>, vector<1x128xf32>
    %13 = vector.broadcast %12 : vector<1x128xf32> to vector<8x128xf32>
    %14 = arith.addf %11, %13 : vector<8x128xf32>
    %15 = arith.addf %8, %14 : vector<8x128xf32>
    %cst_11 = arith.constant 0.000000e+00 : f32
    %16 = vector.broadcast %cst_11 : f32 to vector<8x128xf32>
    %17 = arith.maximumf %15, %16 : vector<8x128xf32>
    %c0_12 = arith.constant 0 : index
    %c0_13 = arith.constant 0 : index
    %18 = vector.load %arg6[%c0_12, %c0_13] : memref<8x128xf32, #tpu.memory_space<vmem>>, vector<8x128xf32>
    tpu.vector_store %arg6[%c0_12, %c0_13], %17 {strides = array<i32>} : memref<8x128xf32, #tpu.memory_space<vmem>>, vector<8x128xf32>,
    return
  }
  func.func @transform_0(%arg0: i32) -> (i32, i32) {
    %c0_i32 = arith.constant 0 : i32
    %c0_i32_0 = arith.constant 0 : i32
    return %arg0, %c0_i32 : i32, i32
  }
  func.func @transform_1(%arg0: i32) -> (i32, i32) {
    %c0_i32 = arith.constant 0 : i32
    %c0_i32_0 = arith.constant 0 : i32
    %c0_i32_1 = arith.constant 0 : i32
    return %c0_i32, %c0_i32_0 : i32, i32
  }
  func.func @transform_2(%arg0: i32) -> (i32, i32) {
    %c0_i32 = arith.constant 0 : i32
    %c0_i32_0 = arith.constant 0 : i32
    %c0_i32_1 = arith.constant 0 : i32
    return %c0_i32, %c0_i32_0 : i32, i32
  }
  func.func @transform_3(%arg0: i32) -> (i32, i32) {
    %c0_i32 = arith.constant 0 : i32
    %c0_i32_0 = arith.constant 0 : i32
    %c0_i32_1 = arith.constant 0 : i32
    return %c0_i32, %c0_i32_0 : i32, i32
  }
  func.func @transform_4(%arg0: i32) -> (i32, i32) {
    %c0_i32 = arith.constant 0 : i32
    %c0_i32_0 = arith.constant 0 : i32
    %c0_i32_1 = arith.constant 0 : i32
    return %c0_i32, %c0_i32_0 : i32, i32
  }
  func.func @transform_5(%arg0: i32) -> (i32, i32) {
    %c0_i32 = arith.constant 0 : i32
    %c0_i32_0 = arith.constant 0 : i32
    return %arg0, %c0_i32 : i32, i32
  }
}

module attributes {stable_mosaic.version = 11 : i64} {
  func.func @_attention_kernel(%arg0: i32, %arg1: memref<8x128xf32, #tpu.memory_space<vmem>>, %arg2: memref<8x128xf32, #tpu.memory_space<vmem>>, %arg3: memref<8x128xf32, #tpu.memory_space<vmem>>, %arg4: memref<128x128xbf16, #tpu.memory_space<vmem>>, %arg5: memref<1x128xf32, #tpu.memory_space<vmem>>, %arg6: memref<128x128xbf16, #tpu.memory_space<vmem>>, %arg7: memref<1x128xf32, #tpu.memory_space<vmem>>, %arg8: memref<8x128xf32, #tpu.memory_space<vmem>>) attributes {dimension_semantics = [#tpu.dimension_semantics<parallel>], iteration_bounds = array<i64: 1>, scalar_prefetch = 0 : i64, scratch_operands = 0 : i64, tpu.core_type = #tpu.core_type<tc>, window_params = [{transform_indices = @transform_0, window_bounds = array<i64: 8, 128>}, {transform_indices = @transform_1, window_bounds = array<i64: 8, 128>}, {transform_indices = @transform_2, window_bounds = array<i64: 8, 128>}, {pipeline_mode = #tpu.pipeline_mode<synchronous>, transform_indices = @transform_3, window_bounds = array<i64: 128, 128>}, {pipeline_mode = #tpu.pipeline_mode<synchronous>, transform_indices = @transform_4, window_bounds = array<i64: 1, 128>}, {pipeline_mode = #tpu.pipeline_mode<synchronous>, transform_indices = @transform_5, window_bounds = array<i64: 128, 128>}, {pipeline_mode = #tpu.pipeline_mode<synchronous>, transform_indices = @transform_6, window_bounds = array<i64: 1, 128>}, {transform_indices = @transform_7, window_bounds = array<i64: 8, 128>}]} {
    %c0 = arith.constant 0 : index
    %c0_0 = arith.constant 0 : index
    %0 = vector.load %arg3[%c0, %c0_0] : memref<8x128xf32, #tpu.memory_space<vmem>>, vector<8x128xf32>
    %1 = arith.truncf %0 : vector<8x128xf32> to vector<8x128xbf16>
    %c0_1 = arith.constant 0 : index
    %c0_2 = arith.constant 0 : index
    %2 = vector.load %arg4[%c0_1, %c0_2] : memref<128x128xbf16, #tpu.memory_space<vmem>>, vector<128x128xbf16>
    %cst = arith.constant dense<0.000000e+00> : vector<8x128xf32>
    %3 = tpu.matmul %1, %2, %cst {dimension_numbers = #tpu.dot_dimension_numbers<[1], [0], [0], [1], [0, 0, 1, 1], [], []>} : vector<8x128xbf16>, vector<128x128xbf16>, vector<8x128xf32> -> vector<8x128xf32>
    %c0_3 = arith.constant 0 : index
    %c0_4 = arith.constant 0 : index
    %4 = vector.load %arg5[%c0_3, %c0_4] : memref<1x128xf32, #tpu.memory_space<vmem>>, vector<1x128xf32>
    %5 = vector.broadcast %4 : vector<1x128xf32> to vector<8x128xf32>
    %6 = arith.addf %3, %5 : vector<8x128xf32>
    %c0_5 = arith.constant 0 : index
    %c0_6 = arith.constant 0 : index
    %7 = vector.load %arg6[%c0_5, %c0_6] : memref<128x128xbf16, #tpu.memory_space<vmem>>, vector<128x128xbf16>
    %cst_7 = arith.constant dense<0.000000e+00> : vector<8x128xf32>
    %8 = tpu.matmul %1, %7, %cst_7 {dimension_numbers = #tpu.dot_dimension_numbers<[1], [0], [0], [1], [0, 0, 1, 1], [], []>} : vector<8x128xbf16>, vector<128x128xbf16>, vector<8x128xf32> -> vector<8x128xf32>
    %c0_8 = arith.constant 0 : index
    %c0_9 = arith.constant 0 : index
    %9 = vector.load %arg7[%c0_8, %c0_9] : memref<1x128xf32, #tpu.memory_space<vmem>>, vector<1x128xf32>
    %10 = vector.broadcast %9 : vector<1x128xf32> to vector<8x128xf32>
    %11 = arith.addf %8, %10 : vector<8x128xf32>
    %cst_10 = arith.constant dense<0.000000e+00> : vector<8xf32>
    %12 = vector.multi_reduction <add>, %6, %cst_10 [1] : vector<8x128xf32> to vector<8xf32>
    %13 = vector.shape_cast %12 : vector<8xf32> to vector<8x1xf32>
    %cst_11 = arith.constant dense<0.000000e+00> : vector<8xf32>
    %14 = vector.multi_reduction <add>, %11, %cst_11 [1] : vector<8x128xf32> to vector<8xf32>
    %15 = vector.shape_cast %14 : vector<8xf32> to vector<8x1xf32>
    %16 = arith.addf %13, %15 : vector<8x1xf32>
    %cst_12 = arith.constant 1.000000e-10 : f32
    %17 = vector.broadcast %cst_12 : f32 to vector<8x1xf32>
    %18 = arith.addf %16, %17 : vector<8x1xf32>
    %c0_13 = arith.constant 0 : index
    %c0_14 = arith.constant 0 : index
    %19 = vector.load %arg1[%c0_13, %c0_14] : memref<8x128xf32, #tpu.memory_space<vmem>>, vector<8x128xf32>
    %20 = arith.mulf %6, %19 : vector<8x128xf32>
    %c0_15 = arith.constant 0 : index
    %c0_16 = arith.constant 0 : index
    %21 = vector.load %arg2[%c0_15, %c0_16] : memref<8x128xf32, #tpu.memory_space<vmem>>, vector<8x128xf32>
    %22 = arith.mulf %11, %21 : vector<8x128xf32>
    %23 = arith.addf %20, %22 : vector<8x128xf32>
    %24 = vector.broadcast %18 : vector<8x1xf32> to vector<8x128xf32>
    %25 = arith.divf %23, %24 : vector<8x128xf32>
    %c0_17 = arith.constant 0 : index
    %c0_18 = arith.constant 0 : index
    %26 = vector.load %arg8[%c0_17, %c0_18] : memref<8x128xf32, #tpu.memory_space<vmem>>, vector<8x128xf32>
    tpu.vector_store %arg8[%c0_17, %c0_18], %25 {strides = array<i32>} : memref<8x128xf32, #tpu.memory_space<vmem>>, vector<8x128xf32>,
    return
  }
  func.func @transform_0(%arg0: i32) -> (i32, i32) {
    %c0_i32 = arith.constant 0 : i32
    %c0_i32_0 = arith.constant 0 : i32
    return %arg0, %c0_i32 : i32, i32
  }
  func.func @transform_1(%arg0: i32) -> (i32, i32) {
    %c0_i32 = arith.constant 0 : i32
    %c0_i32_0 = arith.constant 0 : i32
    return %arg0, %c0_i32 : i32, i32
  }
  func.func @transform_2(%arg0: i32) -> (i32, i32) {
    %c0_i32 = arith.constant 0 : i32
    %c0_i32_0 = arith.constant 0 : i32
    return %arg0, %c0_i32 : i32, i32
  }
  func.func @transform_3(%arg0: i32) -> (i32, i32) {
    %c0_i32 = arith.constant 0 : i32
    %c0_i32_0 = arith.constant 0 : i32
    %c0_i32_1 = arith.constant 0 : i32
    return %c0_i32, %c0_i32_0 : i32, i32
  }
  func.func @transform_4(%arg0: i32) -> (i32, i32) {
    %c0_i32 = arith.constant 0 : i32
    %c0_i32_0 = arith.constant 0 : i32
    %c0_i32_1 = arith.constant 0 : i32
    return %c0_i32, %c0_i32_0 : i32, i32
  }
  func.func @transform_5(%arg0: i32) -> (i32, i32) {
    %c0_i32 = arith.constant 0 : i32
    %c0_i32_0 = arith.constant 0 : i32
    %c0_i32_1 = arith.constant 0 : i32
    return %c0_i32, %c0_i32_0 : i32, i32
  }
  func.func @transform_6(%arg0: i32) -> (i32, i32) {
    %c0_i32 = arith.constant 0 : i32
    %c0_i32_0 = arith.constant 0 : i32
    %c0_i32_1 = arith.constant 0 : i32
    return %c0_i32, %c0_i32_0 : i32, i32
  }
  func.func @transform_7(%arg0: i32) -> (i32, i32) {
    %c0_i32 = arith.constant 0 : i32
    %c0_i32_0 = arith.constant 0 : i32
    return %arg0, %c0_i32 : i32, i32
  }
}

</mosaic_0001>

<bundles_post_ra>
// kernel: forward_pallas.10
= control target key start
LH: loop header
LB: loop body
LE: loop exit
PB: predicated region body
PF: predicated region fallthrough
CT: control target
= control target key end

     0   :  { %vm2217_vm0 = vmmov 0   ;;  %s2757_s1 = inlined_call_operand.vmem [shape: bf16[2432,128], index: 1, kind: input, shape index: {}]   ;;  %s2758_s0 = inlined_call_operand.vmem [shape: f32[8,2432], index: 0, kind: input, shape index: {}]   ;;  %s2759_s2 = inlined_call_operand.vmem [shape: f32[1,128], index: 2, kind: input, shape index: {}]   ;;  %s2760_s3 = inlined_call_operand.vmem [shape: f32[8,128], index: 3, kind: output, shape index: {}]  }
   0x1   :  { %v2064_v0 = vld [vmem:[%s2757_s1 + $0x40] sm:$0xff]   ;;  %v2068_v4 = vld [vmem:[%s2757_s1 + $0x48] sm:$0xff]   ;;  %v2072_v8 = vld [vmem:[%s2757_s1 + $0x50] sm:$0xff]  }
   0x2   :  { %v2065_v1 = vld [vmem:[%s2757_s1] sm:$0xff]   ;;  %1835 = vmatprep.subr.bf16.mxu0 %v2064_v0  ;;  %v2069_v5 = vld [vmem:[%s2757_s1 + $0x8] sm:$0xff]   ;;  %v2073_v9 = vld [vmem:[%s2757_s1 + $0x10] sm:$0xff]  }
   0x3   :  { %v2066_v2 = vld [vmem:[%s2757_s1 + $0xc0] sm:$0xff]   ;;  %1836 = vmatpush3.bf16.msra.mxu0 %v2065_v1  ;;  %v2070_v6 = vld [vmem:[%s2757_s1 + $0xc8] sm:$0xff]   ;;  %v2074_v10 = vld [vmem:[%s2757_s1 + $0xd0] sm:$0xff]  }
   0x4   :  { %v2067_v3 = vld [vmem:[%s2757_s1 + $0x80] sm:$0xff]   ;;  %1857 = vmatprep.subr.bf16.mxu1 %v2066_v2  ;;  %1837 = vmatprep.subr.bf16.mxu0 %v2068_v4  ;;  %v2071_v7 = vld [vmem:[%s2757_s1 + $0x88] sm:$0xff]   ;;  %v2075_v11 = vld [vmem:[%s2757_s1 + $0x90] sm:$0xff]  }
   0x5   :  { %1858 = vmatpush3.bf16.msra.mxu1 %v2067_v3  ;;  %v2076_v12 = vld [vmem:[%s2757_s1 + $0x58] sm:$0xff]   ;;  %v2080_v16 = vld [vmem:[%s2757_s1 + $0x60] sm:$0xff]   ;;  %v2084_v20 = vld [vmem:[%s2757_s1 + $0x68] sm:$0xff]  }
   0x6   :  { %1859 = vmatprep.subr.bf16.mxu1 %v2070_v6  ;;  %v2077_v13 = vld [vmem:[%s2757_s1 + $0x18] sm:$0xff]   ;;  %v2081_v17 = vld [vmem:[%s2757_s1 + $0x20] sm:$0xff]   ;;  %v2085_v21 = vld [vmem:[%s2757_s1 + $0x28] sm:$0xff]  }
   0x7   :  { %1838 = vmatpush3.bf16.msra.mxu0 %v2069_v5  ;;  %v2078_v14 = vld [vmem:[%s2757_s1 + $0xd8] sm:$0xff]   ;;  %v2082_v18 = vld [vmem:[%s2757_s1 + $0xe0] sm:$0xff]   ;;  %v2086_v22 = vld [vmem:[%s2757_s1 + $0xe8] sm:$0xff]  }
   0x8   :  { %1839 = vmatprep.subr.bf16.mxu0 %v2072_v8  ;;  %v2079_v15 = vld [vmem:[%s2757_s1 + $0x98] sm:$0xff]   ;;  %v2083_v19 = vld [vmem:[%s2757_s1 + $0xa0] sm:$0xff]   ;;  %v2087_v23 = vld [vmem:[%s2757_s1 + $0xa8] sm:$0xff]  }
   0x9   :  { %1860 = vmatpush3.bf16.msra.mxu1 %v2071_v7  ;;  %v2088_v24 = vld [vmem:[%s2757_s1 + $0x70] sm:$0xff]   ;;  %v2092_v28 = vld [vmem:[%s2757_s1 + $0x78] sm:$0xff]   ;;  %v16_v31 = vld [vmem:[%s2758_s0 + $0x8] sm:$0xff] }
   0xa   :  { %1861 = vmatprep.subr.bf16.mxu1 %v2074_v10  ;;  %v2089_v25 = vld [vmem:[%s2757_s1 + $0x30] sm:$0xff]   ;;  %v2093_v29 = vld [vmem:[%s2757_s1 + $0x38] sm:$0xff]   ;;  %v35_v32 = vpack.c.bf16 %v16_v31, %v16_v31  ;;  %v15_v34 = vld [vmem:[%s2758_s0] sm:$0xff] }
   0xb   :  { %1840 = vmatpush3.bf16.msra.mxu0 %v2073_v9  ;;  %v2090_v26 = vld [vmem:[%s2757_s1 + $0xf0] sm:$0xff]   ;;  %v2094_v30 = vld [vmem:[%s2757_s1 + $0xf8] sm:$0xff]   ;;  %v34_v35 = vpack.c.bf16 %v15_v34, %v15_v34  ;;  %v2096_v36 = vld [vmem:[%s2757_s1 + $0x140] sm:$0xff]  }
   0xc   :  { %1841 = vmatprep.subr.bf16.mxu0 %v2076_v12  ;;  %v2091_v27 = vld [vmem:[%s2757_s1 + $0xb0] sm:$0xff]   ;;  %v2095_v33 = vld [vmem:[%s2757_s1 + $0xb8] sm:$0xff]   ;;  %1308 = vmatprep.mubr.bf16.mxu0 %v35_v32  ;;  %v2097_v39 = vld [vmem:[%s2757_s1 + $0x100] sm:$0xff]  }
   0xd   :  { %1862 = vmatpush3.bf16.msra.mxu1 %v2075_v11  ;;  %v18_v37 = vld [vmem:[%s2758_s0 + $0x18] sm:$0xff]  ;;  %v17_v40 = vld [vmem:[%s2758_s0 + $0x10] sm:$0xff]  ;;  %v2098_v42 = vld [vmem:[%s2757_s1 + $0x1c0] sm:$0xff]  }
   0xe   :  { %1863 = vmatprep.subr.bf16.mxu1 %v2078_v14  ;;  %v37_v38 = vpack.c.bf16 %v18_v37, %v18_v37  ;;  %v36_v41 = vpack.c.bf16 %v17_v40, %v17_v40  ;;  %v2099_v43 = vld [vmem:[%s2757_s1 + $0x180] sm:$0xff]   ;;  %v2100_v44 = vld [vmem:[%s2757_s1 + $0x148] sm:$0xff]   ;;  %v2104_v48 = vld [vmem:[%s2757_s1 + $0x150] sm:$0xff]  }
   0xf   :  { %1842 = vmatpush3.bf16.msra.mxu0 %v2077_v13  ;;  %v2101_v45 = vld [vmem:[%s2757_s1 + $0x108] sm:$0xff]   ;;  %v2105_v49 = vld [vmem:[%s2757_s1 + $0x110] sm:$0xff]   ;;  %v2108_v52 = vld [vmem:[%s2757_s1 + $0x158] sm:$0xff]  }
  0x10   :  { %1843 = vmatprep.subr.bf16.mxu0 %v2080_v16  ;;  %1348 = vmatprep.mubr.bf16.mxu1 %v37_v38  ;;  %v2102_v46 = vld [vmem:[%s2757_s1 + $0x1c8] sm:$0xff]   ;;  %v2106_v50 = vld [vmem:[%s2757_s1 + $0x1d0] sm:$0xff]   ;;  %v2109_v53 = vld [vmem:[%s2757_s1 + $0x118] sm:$0xff]  }
  0x11   :  { %1864 = vmatpush3.bf16.msra.mxu1 %v2079_v15  ;;  %v2103_v47 = vld [vmem:[%s2757_s1 + $0x188] sm:$0xff]   ;;  %v2107_v51 = vld [vmem:[%s2757_s1 + $0x190] sm:$0xff]   ;;  %v2110_v54 = vld [vmem:[%s2757_s1 + $0x1d8] sm:$0xff]  }
  0x12   :  { %1865 = vmatprep.subr.bf16.mxu1 %v2082_v18  ;;  %v2111_v55 = vld [vmem:[%s2757_s1 + $0x198] sm:$0xff]   ;;  %v2112_v56 = vld [vmem:[%s2757_s1 + $0x160] sm:$0xff]   ;;  %v2116_v60 = vld [vmem:[%s2757_s1 + $0x168] sm:$0xff]  }
  0x13   :  { %1844 = vmatpush3.bf16.msra.mxu0 %v2081_v17  ;;  %v2113_v57 = vld [vmem:[%s2757_s1 + $0x120] sm:$0xff]   ;;  %v2117_v61 = vld [vmem:[%s2757_s1 + $0x128] sm:$0xff]   ;;  %v2120_v0 = vld [vmem:[%s2757_s1 + $0x170] sm:$0xff]  }
  0x14   :  { %1845 = vmatprep.subr.bf16.mxu0 %v2084_v20  ;;  %v2114_v58 = vld [vmem:[%s2757_s1 + $0x1e0] sm:$0xff]   ;;  %v2118_v62 = vld [vmem:[%s2757_s1 + $0x1e8] sm:$0xff]   ;;  %v2121_v1 = vld [vmem:[%s2757_s1 + $0x130] sm:$0xff]  }
  0x15   :  { %1866 = vmatpush3.bf16.msra.mxu1 %v2083_v19  ;;  %v2115_v59 = vld [vmem:[%s2757_s1 + $0x1a0] sm:$0xff]   ;;  %v2119_v63 = vld [vmem:[%s2757_s1 + $0x1a8] sm:$0xff]   ;;  %v2122_v2 = vld [vmem:[%s2757_s1 + $0x1f0] sm:$0xff]  }
  0x16   :  { %1867 = vmatprep.subr.bf16.mxu1 %v2086_v22  ;;  %v2123_v3 = vld [vmem:[%s2757_s1 + $0x1b0] sm:$0xff]   ;;  %v2124_v4 = vld [vmem:[%s2757_s1 + $0x178] sm:$0xff]   ;;  %v20_v7 = vld [vmem:[%s2758_s0 + $0x28] sm:$0xff] }
  0x17   :  { %1846 = vmatpush3.bf16.msra.mxu0 %v2085_v21  ;;  %v2125_v5 = vld [vmem:[%s2757_s1 + $0x138] sm:$0xff]   ;;  %v39_v8 = vpack.c.bf16 %v20_v7, %v20_v7  ;;  %v19_v10 = vld [vmem:[%s2758_s0 + $0x20] sm:$0xff]  ;;  %v21_v16 = vld [vmem:[%s2758_s0 + $0x30] sm:$0xff] }
  0x18   :  { %1847 = vmatprep.subr.bf16.mxu0 %v2088_v24  ;;  %v2126_v6 = vld [vmem:[%s2757_s1 + $0x1f8] sm:$0xff]   ;;  %v38_v11 = vpack.c.bf16 %v19_v10, %v19_v10  ;;  %v2128_v12 = vld [vmem:[%s2757_s1 + $0x240] sm:$0xff]   ;;  %v40_v17 = vpack.c.bf16 %v21_v16, %v21_v16  ;;  %v2132_v20 = vld [vmem:[%s2757_s1 + $0x248] sm:$0xff]  }
  0x19   :  { %1868 = vmatpush3.bf16.msra.mxu1 %v2087_v23  ;;  %v2127_v9 = vld [vmem:[%s2757_s1 + $0x1b8] sm:$0xff]   ;;  %v2129_v15 = vld [vmem:[%s2757_s1 + $0x200] sm:$0xff]   ;;  %v2133_v21 = vld [vmem:[%s2757_s1 + $0x208] sm:$0xff]  }
  0x1a   :  { %1869 = vmatprep.subr.bf16.mxu1 %v2090_v26  ;;  %v22_v13 = vld [vmem:[%s2758_s0 + $0x38] sm:$0xff]  ;;  %v2130_v18 = vld [vmem:[%s2757_s1 + $0x2c0] sm:$0xff]   ;;  %v2134_v22 = vld [vmem:[%s2757_s1 + $0x2c8] sm:$0xff]  }
  0x1b   :  { %1848 = vmatpush3.bf16.msra.mxu0 %v2089_v25  ;;  %v41_v14 = vpack.c.bf16 %v22_v13, %v22_v13  ;;  %v2131_v19 = vld [vmem:[%s2757_s1 + $0x280] sm:$0xff]   ;;  %v2135_v23 = vld [vmem:[%s2757_s1 + $0x288] sm:$0xff]   ;;  %v2136_v24 = vld [vmem:[%s2757_s1 + $0x250] sm:$0xff]  }
  0x1c   :  { %1849 = vmatprep.subr.bf16.mxu0 %v2092_v28  ;;  %v2137_v25 = vld [vmem:[%s2757_s1 + $0x210] sm:$0xff]   ;;  %v2140_v28 = vld [vmem:[%s2757_s1 + $0x258] sm:$0xff]   ;;  %v2144_v32 = vld [vmem:[%s2757_s1 + $0x260] sm:$0xff]  }
  0x1d   :  { %1870 = vmatpush3.bf16.msra.mxu1 %v2091_v27  ;;  %v2138_v26 = vld [vmem:[%s2757_s1 + $0x2d0] sm:$0xff]   ;;  %v2143_v31 = vld [vmem:[%s2757_s1 + $0x298] sm:$0xff]   ;;  %v2146_v34 = vld [vmem:[%s2757_s1 + $0x2e0] sm:$0xff]  }
  0x1e   :  { %1871 = vmatprep.subr.bf16.mxu1 %v2094_v30  ;;  %v2139_v27 = vld [vmem:[%s2757_s1 + $0x290] sm:$0xff]   ;;  %v2142_v30 = vld [vmem:[%s2757_s1 + $0x2d8] sm:$0xff]   ;;  %v2149_v37 = vld [vmem:[%s2757_s1 + $0x228] sm:$0xff]  }
  0x1f   :  { %1850 = vmatpush3.bf16.msra.mxu0 %v2093_v29  ;;  %v2141_v29 = vld [vmem:[%s2757_s1 + $0x218] sm:$0xff]   ;;  %v2150_v38 = vld [vmem:[%s2757_s1 + $0x2e8] sm:$0xff]   ;;  %v2152_v40 = vld [vmem:[%s2757_s1 + $0x270] sm:$0xff]  }
  0x20   :  { %1879 = vmatprep.subr.bf16.mxu0 %v2096_v36  ;;  %v2148_v36 = vld [vmem:[%s2757_s1 + $0x268] sm:$0xff]   ;;  %v2175_v7 = vld [vmem:[%s2757_s1 + $0x398] sm:$0xff]   ;;  %v2178_v10 = vld [vmem:[%s2757_s1 + $0x3e0] sm:$0xff]  }
  0x21   :  { %1872 = vmatpush3.bf16.msra.mxu1 %v2095_v33  ;;  %v2145_v33 = vld [vmem:[%s2757_s1 + $0x220] sm:$0xff]   ;;  %v2181_v13 = vld [vmem:[%s2757_s1 + $0x328] sm:$0xff]   ;;  %v2184_v16 = vld [vmem:[%s2757_s1 + $0x370] sm:$0xff]  }
  0x22   :  { %1309 = vmatmul.mubr.bf16.vlgmr.msra.gmra.mrb[0].mxu0 %v34_v35  ;;  %1901 = vmatprep.subr.bf16.mxu1 %v2098_v42  ;;  %v2147_v35 = vld [vmem:[%s2757_s1 + $0x2a0] sm:$0xff]   ;;  %v2154_v42 = vld [vmem:[%s2757_s1 + $0x2f0] sm:$0xff]  }
  0x23   :  { %1880 = vmatpush3.bf16.msra.mxu0 %v2097_v39  ;;  %1388 = vmatprep.mubr.bf16.mxu0 %v39_v8  ;;  %v2151_v39 = vld [vmem:[%s2757_s1 + $0x2a8] sm:$0xff]   ;;  %v2176_v8 = vld [vmem:[%s2757_s1 + $0x360] sm:$0xff]  }
  0x24   :  { %1349 = vmatmul.mubr.bf16.vlgmr.msra.gmra.mrb[0].mxu1 %v36_v41  ;;  %1881 = vmatprep.subr.bf16.mxu0 %v2100_v44  ;;  %v2153_v41 = vld [vmem:[%s2757_s1 + $0x230] sm:$0xff]   ;;  %v2156_v44 = vld [vmem:[%s2757_s1 + $0x278] sm:$0xff]  }
  0x25   :  { %1902 = vmatpush3.bf16.msra.mxu1 %v2099_v43  ;;  %1428 = vmatprep.mubr.bf16.mxu1 %v41_v14  ;;  %v2155_v43 = vld [vmem:[%s2757_s1 + $0x2b0] sm:$0xff]   ;;  %v2182_v14 = vld [vmem:[%s2757_s1 + $0x3e8] sm:$0xff]  }
  0x26   :  { %1903 = vmatprep.subr.bf16.mxu1 %v2102_v46  ;;  %v2158_v46 = vld [vmem:[%s2757_s1 + $0x2f8] sm:$0xff]  }
  0x27   :  { %1882 = vmatpush3.bf16.msra.mxu0 %v2101_v45  ;;  %v2157_v45 = vld [vmem:[%s2757_s1 + $0x238] sm:$0xff]  }
  0x28   :  { %1883 = vmatprep.subr.bf16.mxu0 %v2104_v48 }
  0x29   :  { %1904 = vmatpush3.bf16.msra.mxu1 %v2103_v47  ;;  %v24_v47 = vld [vmem:[%s2758_s0 + $0x48] sm:$0xff] }
  0x2a   :  { %1905 = vmatprep.subr.bf16.mxu1 %v2106_v50  ;;  %v43_v48 = vpack.c.bf16 %v24_v47, %v24_v47  ;;  %v23_v50 = vld [vmem:[%s2758_s0 + $0x40] sm:$0xff]  ;;  %v2207_v47 = vld [vmem:[%s2757_s1 + $0x468] sm:$0xff]  }
  0x2b   :  { %1884 = vmatpush3.bf16.msra.mxu0 %v2105_v49  ;;  %v2159_v49 = vld [vmem:[%s2757_s1 + $0x2b8] sm:$0xff]  }
  0x2c   :  { %1885 = vmatprep.subr.bf16.mxu0 %v2108_v52  ;;  %v2160_v52 = vld [vmem:[%s2757_s1 + $0x340] sm:$0xff]  }
  0x2d   :  { %1906 = vmatpush3.bf16.msra.mxu1 %v2107_v51  ;;  %v42_v51 = vpack.c.bf16 %v23_v50, %v23_v50  ;;  %v2210_v50 = vld [vmem:[%s2757_s1 + $0x470] sm:$0xff]  }
  0x2e   :  { %1907 = vmatprep.subr.bf16.mxu1 %v2110_v54 }
  0x2f   :  { %1886 = vmatpush3.bf16.msra.mxu0 %v2109_v53  ;;  %v26_v53 = vld [vmem:[%s2758_s0 + $0x58] sm:$0xff] }
  0x30   :  { %1887 = vmatprep.subr.bf16.mxu0 %v2112_v56  ;;  %v45_v54 = vpack.c.bf16 %v26_v53, %v26_v53  ;;  %v25_v56 = vld [vmem:[%s2758_s0 + $0x50] sm:$0xff]  ;;  %v32_v53 = vld [vmem:[%s2758_s0 + $0x88] sm:$0xff] }
  0x31   :  { %1908 = vmatpush3.bf16.msra.mxu1 %v2111_v55  ;;  %v2161_v55 = vld [vmem:[%s2757_s1 + $0x300] sm:$0xff]  }
  0x32   :  { %1909 = vmatprep.subr.bf16.mxu1 %v2114_v58  ;;  %v2162_v58 = vld [vmem:[%s2757_s1 + $0x3c0] sm:$0xff]  }
  0x33   :  { %1888 = vmatpush3.bf16.msra.mxu0 %v2113_v57  ;;  %v44_v57 = vpack.c.bf16 %v25_v56, %v25_v56  ;;  %v2212_v56 = vld [vmem:[%s2757_s1 + $0x4b0] sm:$0xff]  }
  0x34   :  { %1889 = vmatprep.subr.bf16.mxu0 %v2116_v60  ;;  %v2164_v60 = vld [vmem:[%s2757_s1 + $0x348] sm:$0xff]  }
  0x35   :  { %1910 = vmatpush3.bf16.msra.mxu1 %v2115_v59  ;;  %v2163_v59 = vld [vmem:[%s2757_s1 + $0x380] sm:$0xff]  }
  0x36   :  { %1911 = vmatprep.subr.bf16.mxu1 %v2118_v62  ;;  %v2166_v62 = vld [vmem:[%s2757_s1 + $0x3c8] sm:$0xff]  }
  0x37   :  { %1890 = vmatpush3.bf16.msra.mxu0 %v2117_v61  ;;  %v2165_v61 = vld [vmem:[%s2757_s1 + $0x308] sm:$0xff]  }
  0x38   :  { %1891 = vmatprep.subr.bf16.mxu0 %v2120_v0  ;;  %v2168_v0 = vld [vmem:[%s2757_s1 + $0x350] sm:$0xff]  }
  0x39   :  { %1912 = vmatpush3.bf16.msra.mxu1 %v2119_v63  ;;  %v2167_v63 = vld [vmem:[%s2757_s1 + $0x388] sm:$0xff]  }
  0x3a   :  { %1913 = vmatprep.subr.bf16.mxu1 %v2122_v2  ;;  %v2170_v2 = vld [vmem:[%s2757_s1 + $0x3d0] sm:$0xff]  }
  0x3b   :  { %1892 = vmatpush3.bf16.msra.mxu0 %v2121_v1  ;;  %v2169_v1 = vld [vmem:[%s2757_s1 + $0x310] sm:$0xff]  }
  0x3c   :  { %1893 = vmatprep.subr.bf16.mxu0 %v2124_v4  ;;  %v2172_v4 = vld [vmem:[%s2757_s1 + $0x358] sm:$0xff]  }
  0x3d   :  { %1914 = vmatpush3.bf16.msra.mxu1 %v2123_v3  ;;  %v2171_v3 = vld [vmem:[%s2757_s1 + $0x390] sm:$0xff]  }
  0x3e   :  { %1915 = vmatprep.subr.bf16.mxu1 %v2126_v6  ;;  %v2174_v6 = vld [vmem:[%s2757_s1 + $0x3d8] sm:$0xff]  }
  0x3f   :  { %1894 = vmatpush3.bf16.msra.mxu0 %v2125_v5  ;;  %v2173_v5 = vld [vmem:[%s2757_s1 + $0x318] sm:$0xff]  }
  0x40   :  { %1923 = vmatprep.subr.bf16.mxu0 %v2128_v12  ;;  %v2180_v12 = vld [vmem:[%s2757_s1 + $0x368] sm:$0xff]  }
  0x41   :  { %1916 = vmatpush3.bf16.msra.mxu1 %v2127_v9  ;;  %v2177_v9 = vld [vmem:[%s2757_s1 + $0x320] sm:$0xff]  }
  0x42   :  { %1389 = vmatmul.mubr.bf16.vlgmr.msra.gmra.mrb[4].mxu0 %v38_v11  ;;  %1945 = vmatprep.subr.bf16.mxu1 %v2130_v18  ;;  %v2179_v11 = vld [vmem:[%s2757_s1 + $0x3a0] sm:$0xff]   ;;  %v2186_v18 = vld [vmem:[%s2757_s1 + $0x3f0] sm:$0xff]  }
  0x43   :  { %1924 = vmatpush3.bf16.msra.mxu0 %v2129_v15  ;;  %1468 = vmatprep.mubr.bf16.mxu0 %v43_v48  ;;  %v2183_v15 = vld [vmem:[%s2757_s1 + $0x3a8] sm:$0xff]   ;;  %v2206_v48 = vld [vmem:[%s2757_s1 + $0x4a0] sm:$0xff]  }
  0x44   :  { %1429 = vmatmul.mubr.bf16.vlgmr.msra.gmra.mrb[4].mxu1 %v40_v17  ;;  %1925 = vmatprep.subr.bf16.mxu0 %v2132_v20  ;;  %v2185_v17 = vld [vmem:[%s2757_s1 + $0x330] sm:$0xff]   ;;  %v2188_v20 = vld [vmem:[%s2757_s1 + $0x378] sm:$0xff]  }
  0x45   :  { %1946 = vmatpush3.bf16.msra.mxu1 %v2131_v19  ;;  %1508 = vmatprep.mubr.bf16.mxu1 %v45_v54  ;;  %v2187_v19 = vld [vmem:[%s2757_s1 + $0x3b0] sm:$0xff]   ;;  %v2213_v54 = vld [vmem:[%s2757_s1 + $0x478] sm:$0xff]  }
  0x46   :  { %1947 = vmatprep.subr.bf16.mxu1 %v2134_v22  ;;  %v2190_v22 = vld [vmem:[%s2757_s1 + $0x3f8] sm:$0xff]  }
  0x47   :  { %1926 = vmatpush3.bf16.msra.mxu0 %v2133_v21  ;;  %v2189_v21 = vld [vmem:[%s2757_s1 + $0x338] sm:$0xff]  }
  0x48   :  { %1927 = vmatprep.subr.bf16.mxu0 %v2136_v24 }
  0x49   :  { %1948 = vmatpush3.bf16.msra.mxu1 %v2135_v23  ;;  %v28_v23 = vld [vmem:[%s2758_s0 + $0x68] sm:$0xff] }
  0x4a   :  { %1949 = vmatprep.subr.bf16.mxu1 %v2138_v26  ;;  %v47_v24 = vpack.c.bf16 %v28_v23, %v28_v23  ;;  %v27_v26 = vld [vmem:[%s2758_s0 + $0x60] sm:$0xff] }
  0x4b   :  { %1928 = vmatpush3.bf16.msra.mxu0 %v2137_v25  ;;  %v2191_v25 = vld [vmem:[%s2757_s1 + $0x3b8] sm:$0xff]  }
  0x4c   :  { %1929 = vmatprep.subr.bf16.mxu0 %v2140_v28  ;;  %v2192_v28 = vld [vmem:[%s2757_s1 + $0x440] sm:$0xff]  }
  0x4d   :  { %1950 = vmatpush3.bf16.msra.mxu1 %v2139_v27  ;;  %v46_v27 = vpack.c.bf16 %v27_v26, %v27_v26 }
  0x4e   :  { %1951 = vmatprep.subr.bf16.mxu1 %v2142_v30 }
  0x4f   :  { %1930 = vmatpush3.bf16.msra.mxu0 %v2141_v29  ;;  %v30_v29 = vld [vmem:[%s2758_s0 + $0x78] sm:$0xff] }
  0x50   :  { %1931 = vmatprep.subr.bf16.mxu0 %v2144_v32  ;;  %v49_v30 = vpack.c.bf16 %v30_v29, %v30_v29  ;;  %v29_v32 = vld [vmem:[%s2758_s0 + $0x70] sm:$0xff] }
  0x51   :  { %1952 = vmatpush3.bf16.msra.mxu1 %v2143_v31  ;;  %v2193_v31 = vld [vmem:[%s2757_s1 + $0x400] sm:$0xff]  }
  0x52   :  { %1953 = vmatprep.subr.bf16.mxu1 %v2146_v34  ;;  %v2194_v34 = vld [vmem:[%s2757_s1 + $0x480] sm:$0xff]  }
  0x53   :  { %1932 = vmatpush3.bf16.msra.mxu0 %v2145_v33  ;;  %v48_v33 = vpack.c.bf16 %v29_v32, %v29_v32 }
  0x54   :  { %1933 = vmatprep.subr.bf16.mxu0 %v2148_v36  ;;  %v2195_v36 = vld [vmem:[%s2757_s1 + $0x448] sm:$0xff]  }
  0x55   :  { %1954 = vmatpush3.bf16.msra.mxu1 %v2147_v35  ;;  %v2216_v35 = vmov 0.0  }
  0x56   :  { %1955 = vmatprep.subr.bf16.mxu1 %v2150_v38  ;;  %v2197_v38 = vld [vmem:[%s2757_s1 + $0x488] sm:$0xff]  }
  0x57   :  { %1934 = vmatpush3.bf16.msra.mxu0 %v2149_v37  ;;  %v2196_v37 = vld [vmem:[%s2757_s1 + $0x408] sm:$0xff]  }
  0x58   :  { %1935 = vmatprep.subr.bf16.mxu0 %v2152_v40  ;;  %v2199_v40 = vld [vmem:[%s2757_s1 + $0x410] sm:$0xff]  }
  0x59   :  { %1956 = vmatpush3.bf16.msra.mxu1 %v2151_v39  ;;  %v2198_v39 = vld [vmem:[%s2757_s1 + $0x450] sm:$0xff]  }
  0x5a   :  { %1957 = vmatprep.subr.bf16.mxu1 %v2154_v42  ;;  %v2201_v42 = vld [vmem:[%s2757_s1 + $0x458] sm:$0xff]  }
  0x5b   :  { %1936 = vmatpush3.bf16.msra.mxu0 %v2153_v41  ;;  %v2200_v41 = vld [vmem:[%s2757_s1 + $0x490] sm:$0xff]  }
  0x5c   :  { %1937 = vmatprep.subr.bf16.mxu0 %v2156_v44  ;;  %v2204_v44 = vld [vmem:[%s2757_s1 + $0x460] sm:$0xff]  }
  0x5d   :  { %1958 = vmatpush3.bf16.msra.mxu1 %v2155_v43  ;;  %v2202_v43 = vld [vmem:[%s2757_s1 + $0x418] sm:$0xff]  }
  0x5e   :  { %1959 = vmatprep.subr.bf16.mxu1 %v2158_v46  ;;  %v2205_v46 = vld [vmem:[%s2757_s1 + $0x420] sm:$0xff]  }
  0x5f   :  { %1938 = vmatpush3.bf16.msra.mxu0 %v2157_v45  ;;  %v2203_v45 = vld [vmem:[%s2757_s1 + $0x498] sm:$0xff]  }
  0x60   :  { %1967 = vmatprep.subr.bf16.mxu0 %v2160_v52  ;;  %v2211_v52 = vld [vmem:[%s2757_s1 + $0x430] sm:$0xff]  }
  0x61   :  { %1960 = vmatpush3.bf16.msra.mxu1 %v2159_v49  ;;  %v2208_v49 = vld [vmem:[%s2757_s1 + $0x428] sm:$0xff]  }
  0x62   :  { %1469 = vmatmul.mubr.bf16.vlgmr.msra.gmra.mrb[8].mxu0 %v42_v51  ;;  %1989 = vmatprep.subr.bf16.mxu1 %v2162_v58  ;;  %v2209_v51 = vld [vmem:[%s2757_s1 + $0x4a8] sm:$0xff]   ;;  %v31_v58 = vld [vmem:[%s2758_s0 + $0x80] sm:$0xff] }
  0x63   :  { %1968 = vmatpush3.bf16.msra.mxu0 %v2161_v55  ;;  %1548 = vmatprep.mubr.bf16.mxu0 %v47_v24  ;;  %v51_v55 = vpack.c.bf16 %v32_v53, %v32_v53 }
  0x64   :  { %1509 = vmatmul.mubr.bf16.vlgmr.msra.gmra.mrb[8].mxu1 %v44_v57  ;;  %1969 = vmatprep.subr.bf16.mxu0 %v2164_v60  ;;  %v2214_v57 = vld [vmem:[%s2757_s1 + $0x438] sm:$0xff]   ;;  %v50_v60 = vpack.c.bf16 %v31_v58, %v31_v58 }
  0x65   :  { %1990 = vmatpush3.bf16.msra.mxu1 %v2163_v59  ;;  %1588 = vmatprep.mubr.bf16.mxu1 %v49_v30  ;;  %v2215_v59 = vld [vmem:[%s2757_s1 + $0x4b8] sm:$0xff]  }
  0x66   :  { %1991 = vmatprep.subr.bf16.mxu1 %v2166_v62 }
  0x67   :  { %1970 = vmatpush3.bf16.msra.mxu0 %v2165_v61  ;;  %v33_v61 = vld [vmem:[%s2758_s0 + $0x90] sm:$0xff] }
  0x68   :  { %1971 = vmatprep.subr.bf16.mxu0 %v2168_v0  ;;  %v52_v62 = vpack.c.bf16 %v33_v61, %v33_v61  ;;  %v1682_v0 = vld [vmem:[%s2759_s2] ss:$0 sm:$0xff] }
  0x69   :  { %1992 = vmatpush3.bf16.msra.mxu1 %v2167_v63 }
  0x6a   :  { %1993 = vmatprep.subr.bf16.mxu1 %v2170_v2 }
  0x6b   :  { %1972 = vmatpush3.bf16.msra.mxu0 %v2169_v1 }
  0x6c   :  { %1973 = vmatprep.subr.bf16.mxu0 %v2172_v4 }
  0x6d   :  { %1994 = vmatpush3.bf16.msra.mxu1 %v2171_v3 }
  0x6e   :  { %1995 = vmatprep.subr.bf16.mxu1 %v2174_v6 }
  0x6f   :  { %1974 = vmatpush3.bf16.msra.mxu0 %v2173_v5 }
  0x70   :  { %1975 = vmatprep.subr.bf16.mxu0 %v2176_v8 }
  0x71   :  { %1996 = vmatpush3.bf16.msra.mxu1 %v2175_v7 }
  0x72   :  { %1997 = vmatprep.subr.bf16.mxu1 %v2178_v10 }
  0x73   :  { %1976 = vmatpush3.bf16.msra.mxu0 %v2177_v9 }
  0x74   :  { %1977 = vmatprep.subr.bf16.mxu0 %v2180_v12 }
  0x75   :  { %1998 = vmatpush3.bf16.msra.mxu1 %v2179_v11 }
  0x76   :  { %1999 = vmatprep.subr.bf16.mxu1 %v2182_v14 }
  0x77   :  { %1978 = vmatpush3.bf16.msra.mxu0 %v2181_v13 }
  0x78   :  { %1979 = vmatprep.subr.bf16.mxu0 %v2184_v16 }
  0x79   :  { %2000 = vmatpush3.bf16.msra.mxu1 %v2183_v15 }
  0x7a   :  { %2001 = vmatprep.subr.bf16.mxu1 %v2186_v18 }
  0x7b   :  { %1980 = vmatpush3.bf16.msra.mxu0 %v2185_v17 }
  0x7c   :  { %1981 = vmatprep.subr.bf16.mxu0 %v2188_v20 }
  0x7d   :  { %2002 = vmatpush3.bf16.msra.mxu1 %v2187_v19 }
  0x7e   :  { %2003 = vmatprep.subr.bf16.mxu1 %v2190_v22 }
  0x7f   :  { %1982 = vmatpush3.bf16.msra.mxu0 %v2189_v21 }
  0x80   :  { %2011 = vmatprep.subr.bf16.mxu0 %v2192_v28 }
  0x81   :  { %2004 = vmatpush3.bf16.msra.mxu1 %v2191_v25 }
  0x82   :  { %1549 = vmatmul.mubr.bf16.vlgmr.msra.gmra.mrb[12].mxu0 %v46_v27  ;;  %2042 = vmatprep.subr.bf16.mxu1 %v2216_v35 }
  0x83   :  { %2012 = vmatpush3.bf16.msra.mxu0 %v2193_v31  ;;  %1628 = vmatprep.mubr.bf16.mxu0 %v51_v55 }
  0x84   :  { %1589 = vmatmul.mubr.bf16.vlgmr.msra.gmra.mrb[12].mxu1 %v48_v33  ;;  %2013 = vmatprep.subr.bf16.mxu0 %v2195_v36 }
  0x85   :  { %2043 = vmatpush3.bf16.msra.mxu1 %v2194_v34  ;;  %2058 = vmatprep.mubr.msk.bf16.mxu1 %vm2217_vm0, %v2216_v35 }
  0x86   :  { %2044 = vmatprep.subr.bf16.mxu1 %v2216_v35 }
  0x87   :  { %2014 = vmatpush3.bf16.msra.mxu0 %v2196_v37 }
  0x88   :  { %2015 = vmatprep.subr.bf16.mxu0 %v2198_v39 }
  0x89   :  { %2045 = vmatpush3.bf16.msra.mxu1 %v2197_v38 }
  0x8a   :  { %2046 = vmatprep.subr.bf16.mxu1 %v2216_v35 }
  0x8b   :  { %2016 = vmatpush3.bf16.msra.mxu0 %v2199_v40 }
  0x8c   :  { %2017 = vmatprep.subr.bf16.mxu0 %v2201_v42 }
  0x8d   :  { %2047 = vmatpush3.bf16.msra.mxu1 %v2200_v41 }
  0x8e   :  { %2048 = vmatprep.subr.bf16.mxu1 %v2216_v35 }
  0x8f   :  { %2018 = vmatpush3.bf16.msra.mxu0 %v2202_v43 }
  0x90   :  { %2019 = vmatprep.subr.bf16.mxu0 %v2204_v44 }
  0x91   :  { %2049 = vmatpush3.bf16.msra.mxu1 %v2203_v45 }
  0x92   :  { %2050 = vmatprep.subr.bf16.mxu1 %v2216_v35 }
  0x93   :  { %2020 = vmatpush3.bf16.msra.mxu0 %v2205_v46 }
  0x94   :  { %2021 = vmatprep.subr.bf16.mxu0 %v2207_v47 }
  0x95   :  { %2051 = vmatpush3.bf16.msra.mxu1 %v2206_v48 }
  0x96   :  { %2052 = vmatprep.subr.bf16.mxu1 %v2216_v35 }
  0x97   :  { %2022 = vmatpush3.bf16.msra.mxu0 %v2208_v49 }
  0x98   :  { %2023 = vmatprep.subr.bf16.mxu0 %v2210_v50 }
  0x99   :  { %2053 = vmatpush3.bf16.msra.mxu1 %v2209_v51 }
  0x9a   :  { %2054 = vmatprep.subr.bf16.mxu1 %v2216_v35 }
  0x9b   :  { %2024 = vmatpush3.bf16.msra.mxu0 %v2211_v52 }
  0x9c   :  { %2025 = vmatprep.subr.bf16.mxu0 %v2213_v54 }
  0x9d   :  { %2055 = vmatpush3.bf16.msra.mxu1 %v2212_v56 }
  0x9e   :  { %2056 = vmatprep.subr.bf16.mxu1 %v2216_v35 }
  0x9f   :  { %2026 = vmatpush3.bf16.msra.mxu0 %v2214_v57 }
  0xa1   :  { %2057 = vmatpush3.bf16.msra.mxu1 %v2215_v59 }
  0xa2   :  { %1629 = vmatmul.mubr.bf16.vlgmr.msra.gmra.mrb[16].mxu0 %v50_v60 }
  0xa4   :  { %2059 = vmatmul.mubr.bf16.vlgmr.msra.gmra.mrb[16].mxu1 %v52_v62 }
  0xf5   :  { %v1851_v63 = vpop.f32.mrb[0].mxu0 }
  0xf6   :  { %v1852_v1 = vpop.f32.mrb[1].mxu0 }
  0xf7   :  { %v1853_v2 = vadd.f32 %v1852_v1, %v1851_v63  ;;  %v1854_v3 = vpop.f32.mrb[2].mxu0  ;;  %v1873_v4 = vpop.f32.mrb[0].mxu1 }
  0xf8   :  { %v1855_v5 = vpop.f32.mrb[3].mxu0  ;;  %v1874_v7 = vpop.f32.mrb[1].mxu1 }
  0xf9   :  { %v1311_v6 = vadd.f32 %v1853_v2, %v1682_v0  ;;  %v1875_v8 = vadd.f32 %v1874_v7, %v1873_v4  ;;  %v1876_v9 = vpop.f32.mrb[2].mxu1 }
  0xfa   :  { %v1877_v10 = vpop.f32.mrb[3].mxu1 }
  0xfb   :  { %v1351_v11 = vadd.f32 %v1875_v8, %v1311_v6 }
 0x115   :  { %v1895_v12 = vpop.f32.mrb[4].mxu0 }
 0x116   :  { %v1896_v13 = vpop.f32.mrb[5].mxu0 }
 0x117   :  { %v1897_v14 = vadd.f32 %v1896_v13, %v1895_v12  ;;  %v1898_v15 = vpop.f32.mrb[6].mxu0  ;;  %v1917_v16 = vpop.f32.mrb[4].mxu1 }
 0x118   :  { %v1899_v17 = vpop.f32.mrb[7].mxu0  ;;  %v1918_v19 = vpop.f32.mrb[5].mxu1 }
 0x119   :  { %v1391_v18 = vadd.f32 %v1897_v14, %v1351_v11  ;;  %v1919_v20 = vadd.f32 %v1918_v19, %v1917_v16  ;;  %v1920_v21 = vpop.f32.mrb[6].mxu1 }
 0x11a   :  { %v1921_v22 = vpop.f32.mrb[7].mxu1 }
 0x11b   :  { %v1431_v23 = vadd.f32 %v1919_v20, %v1391_v18 }
 0x135   :  { %v1939_v24 = vpop.f32.mrb[8].mxu0 }
 0x136   :  { %v1940_v25 = vpop.f32.mrb[9].mxu0 }
 0x137   :  { %v1941_v26 = vadd.f32 %v1940_v25, %v1939_v24  ;;  %v1942_v27 = vpop.f32.mrb[10].mxu0  ;;  %v1961_v28 = vpop.f32.mrb[8].mxu1 }
 0x138   :  { %v1943_v29 = vpop.f32.mrb[11].mxu0  ;;  %v1962_v30 = vpop.f32.mrb[9].mxu1 }
 0x139   :  { %v1471_v31 = vadd.f32 %v1941_v26, %v1431_v23  ;;  %v1963_v32 = vadd.f32 %v1962_v30, %v1961_v28  ;;  %v1964_v33 = vpop.f32.mrb[10].mxu1 }
 0x13a   :  { %v1965_v34 = vpop.f32.mrb[11].mxu1 }
 0x13b   :  { %v1511_v35 = vadd.f32 %v1963_v32, %v1471_v31 }
 0x155   :  { %v1983_v36 = vpop.f32.mrb[12].mxu0 }
 0x156   :  { %v1984_v37 = vpop.f32.mrb[13].mxu0 }
 0x157   :  { %v1985_v38 = vadd.f32 %v1984_v37, %v1983_v36  ;;  %v1986_v39 = vpop.f32.mrb[14].mxu0  ;;  %v2005_v40 = vpop.f32.mrb[12].mxu1 }
 0x158   :  { %v1987_v41 = vpop.f32.mrb[15].mxu0  ;;  %v2006_v43 = vpop.f32.mrb[13].mxu1 }
 0x159   :  { %v1551_v42 = vadd.f32 %v1985_v38, %v1511_v35  ;;  %v2007_v44 = vadd.f32 %v2006_v43, %v2005_v40  ;;  %v2008_v45 = vpop.f32.mrb[14].mxu1 }
 0x15a   :  { %v2009_v46 = vpop.f32.mrb[15].mxu1 }
 0x15b   :  { %v1591_v47 = vadd.f32 %v2007_v44, %v1551_v42 }
 0x175   :  { %v2027_v48 = vpop.f32.mrb[16].mxu0 }
 0x176   :  { %v2028_v49 = vpop.f32.mrb[17].mxu0 }
 0x177   :  { %v2029_v50 = vadd.f32 %v2028_v49, %v2027_v48  ;;  %v2030_v51 = vpop.f32.mrb[18].mxu0  ;;  %v1670_v52 = vpop.f32.mrb[16].mxu1 }
 0x178   :  { %v2031_v53 = vpop.f32.mrb[19].mxu0  ;;  %v2060_v55 = vpop.f32.mrb[17].mxu1 }
 0x179   :  { %v1631_v54 = vadd.f32 %v2029_v50, %v1591_v47  ;;  %v1673_v56 = vpop.f32.mrb[18].mxu1 }
 0x17a   :  { %v2061_v58 = vpop.f32.mrb[19].mxu1 }
 0x17b   :  { %v1671_v57 = vadd.f32 %v1670_v52, %v1631_v54 }
 0x17d   :  { %v1676_v59 = vmax.f32 %v1671_v57, 0.0 }
 0x17f   :  { %1677 = vst [vmem:[%s2760_s3] sm:$0xff] %v1676_v59 }

// kernel: forward_pallas.11
= control target key start
LH: loop header
LB: loop body
LE: loop exit
PB: predicated region body
PF: predicated region fallthrough
CT: control target
= control target key end

     0   :  { %v182_v0 = vmov 0.0   ;;  %vm183_vm0 = vmmov 0   ;;  %s237_s1 = inlined_call_operand.vmem [shape: bf16[128,128], index: 1, kind: input, shape index: {}]   ;;  %s238_s0 = inlined_call_operand.vmem [shape: f32[8,128], index: 0, kind: input, shape index: {}]   ;;  %s239_s2 = inlined_call_operand.vmem [shape: f32[1,128], index: 2, kind: input, shape index: {}]   ;;  %s240_s3 = inlined_call_operand.vmem [shape: f32[8,128], index: 3, kind: output, shape index: {}]  }
   0x1   :  { %152 = vmatprep.subr.bf16.mxu0 %v182_v0  ;;  %v174_v1 = vld [vmem:[%s237_s1] sm:$0xff]   ;;  %168 = vmatprep.mubr.msk.bf16.mxu0 %vm183_vm0, %v182_v0  ;;  %v175_v2 = vld [vmem:[%s237_s1 + $0x8] sm:$0xff]   ;;  %v176_v3 = vld [vmem:[%s237_s1 + $0x10] sm:$0xff]  }
   0x2   :  { %153 = vmatpush3.bf16.msra.mxu0 %v174_v1  ;;  %v177_v4 = vld [vmem:[%s237_s1 + $0x18] sm:$0xff]   ;;  %v178_v5 = vld [vmem:[%s237_s1 + $0x20] sm:$0xff]   ;;  %v179_v6 = vld [vmem:[%s237_s1 + $0x28] sm:$0xff]  }
   0x3   :  { %154 = vmatprep.subr.bf16.mxu0 %v182_v0  ;;  %v180_v7 = vld [vmem:[%s237_s1 + $0x30] sm:$0xff]   ;;  %v181_v8 = vld [vmem:[%s237_s1 + $0x38] sm:$0xff]   ;;  %v15_v9 = vld [vmem:[%s238_s0] sm:$0xff] }
   0x4   :  { %v16_v10 = vpack.c.bf16 %v15_v9, %v15_v9  ;;  %v134_v11 = vld [vmem:[%s239_s2] ss:$0 sm:$0xff] }
   0x6   :  { %155 = vmatpush3.bf16.msra.mxu0 %v175_v2 }
   0x7   :  { %156 = vmatprep.subr.bf16.mxu0 %v182_v0 }
   0xa   :  { %157 = vmatpush3.bf16.msra.mxu0 %v176_v3 }
   0xb   :  { %158 = vmatprep.subr.bf16.mxu0 %v182_v0 }
   0xe   :  { %159 = vmatpush3.bf16.msra.mxu0 %v177_v4 }
   0xf   :  { %160 = vmatprep.subr.bf16.mxu0 %v182_v0 }
  0x12   :  { %161 = vmatpush3.bf16.msra.mxu0 %v178_v5 }
  0x13   :  { %162 = vmatprep.subr.bf16.mxu0 %v182_v0 }
  0x16   :  { %163 = vmatpush3.bf16.msra.mxu0 %v179_v6 }
  0x17   :  { %164 = vmatprep.subr.bf16.mxu0 %v182_v0 }
  0x1a   :  { %165 = vmatpush3.bf16.msra.mxu0 %v180_v7 }
  0x1b   :  { %166 = vmatprep.subr.bf16.mxu0 %v182_v0 }
  0x1e   :  { %167 = vmatpush3.bf16.msra.mxu0 %v181_v8 }
  0x21   :  { %169 = vmatmul.mubr.bf16.vlgmr.msra.gmra.mrb[0].mxu0 %v16_v10 }
  0xf4   :  { %v122_v12 = vpop.f32.mrb[0].mxu0 }
  0xf5   :  { %v123_v13 = vadd.f32 %v134_v11, %v122_v12  ;;  %v170_v14 = vpop.f32.mrb[1].mxu0 }
  0xf6   :  { %v125_v15 = vpop.f32.mrb[2].mxu0 }
  0xf7   :  { %v128_v16 = vmax.f32 %v123_v13, 0.0  ;;  %v171_v17 = vpop.f32.mrb[3].mxu0 }
  0xf9   :  { %129 = vst [vmem:[%s240_s3] sm:$0xff] %v128_v16 }

// kernel: forward_pallas.12
= control target key start
LH: loop header
LB: loop body
LE: loop exit
PB: predicated region body
PF: predicated region fallthrough
CT: control target
= control target key end

     0   :  { %v181_v0 = vmov 0.0   ;;  %vm182_vm0 = vmmov 0   ;;  %s236_s1 = inlined_call_operand.vmem [shape: bf16[128,128], index: 1, kind: input, shape index: {}]   ;;  %s237_s0 = inlined_call_operand.vmem [shape: f32[8,128], index: 0, kind: input, shape index: {}]   ;;  %s238_s2 = inlined_call_operand.vmem [shape: f32[1,128], index: 2, kind: input, shape index: {}]   ;;  %s239_s3 = inlined_call_operand.vmem [shape: f32[8,128], index: 3, kind: output, shape index: {}]  }
   0x1   :  { %151 = vmatprep.subr.bf16.mxu0 %v181_v0  ;;  %v173_v1 = vld [vmem:[%s236_s1] sm:$0xff]   ;;  %167 = vmatprep.mubr.msk.bf16.mxu0 %vm182_vm0, %v181_v0  ;;  %v174_v2 = vld [vmem:[%s236_s1 + $0x8] sm:$0xff]   ;;  %v175_v3 = vld [vmem:[%s236_s1 + $0x10] sm:$0xff]  }
   0x2   :  { %152 = vmatpush3.bf16.msra.mxu0 %v173_v1  ;;  %v176_v4 = vld [vmem:[%s236_s1 + $0x18] sm:$0xff]   ;;  %v177_v5 = vld [vmem:[%s236_s1 + $0x20] sm:$0xff]   ;;  %v178_v6 = vld [vmem:[%s236_s1 + $0x28] sm:$0xff]  }
   0x3   :  { %153 = vmatprep.subr.bf16.mxu0 %v181_v0  ;;  %v179_v7 = vld [vmem:[%s236_s1 + $0x30] sm:$0xff]   ;;  %v180_v8 = vld [vmem:[%s236_s1 + $0x38] sm:$0xff]   ;;  %v15_v9 = vld [vmem:[%s237_s0] sm:$0xff] }
   0x4   :  { %v16_v10 = vpack.c.bf16 %v15_v9, %v15_v9  ;;  %v133_v11 = vld [vmem:[%s238_s2] ss:$0 sm:$0xff] }
   0x6   :  { %154 = vmatpush3.bf16.msra.mxu0 %v174_v2 }
   0x7   :  { %155 = vmatprep.subr.bf16.mxu0 %v181_v0 }
   0xa   :  { %156 = vmatpush3.bf16.msra.mxu0 %v175_v3 }
   0xb   :  { %157 = vmatprep.subr.bf16.mxu0 %v181_v0 }
   0xe   :  { %158 = vmatpush3.bf16.msra.mxu0 %v176_v4 }
   0xf   :  { %159 = vmatprep.subr.bf16.mxu0 %v181_v0 }
  0x12   :  { %160 = vmatpush3.bf16.msra.mxu0 %v177_v5 }
  0x13   :  { %161 = vmatprep.subr.bf16.mxu0 %v181_v0 }
  0x16   :  { %162 = vmatpush3.bf16.msra.mxu0 %v178_v6 }
  0x17   :  { %163 = vmatprep.subr.bf16.mxu0 %v181_v0 }
  0x1a   :  { %164 = vmatpush3.bf16.msra.mxu0 %v179_v7 }
  0x1b   :  { %165 = vmatprep.subr.bf16.mxu0 %v181_v0 }
  0x1e   :  { %166 = vmatpush3.bf16.msra.mxu0 %v180_v8 }
  0x21   :  { %168 = vmatmul.mubr.bf16.vlgmr.msra.gmra.mrb[0].mxu0 %v16_v10 }
  0xf4   :  { %v122_v12 = vpop.f32.mrb[0].mxu0 }
  0xf5   :  { %v123_v13 = vadd.f32 %v133_v11, %v122_v12  ;;  %v169_v14 = vpop.f32.mrb[1].mxu0 }
  0xf6   :  { %v125_v15 = vpop.f32.mrb[2].mxu0 }
  0xf7   :  { %128 = vst [vmem:[%s239_s3] sm:$0xff] %v123_v13  ;;  %v170_v16 = vpop.f32.mrb[3].mxu0 }

// kernel: forward_pallas.13
= control target key start
LH: loop header
LB: loop body
LE: loop exit
PB: predicated region body
PF: predicated region fallthrough
CT: control target
= control target key end

     0   :  { %v348_v0 = vmov 0.0   ;;  %vm349_vm0 = vmmov 0   ;;  %s440_s1 = inlined_call_operand.vmem [shape: bf16[128,128], index: 1, kind: input, shape index: {}]   ;;  %s441_s3 = inlined_call_operand.vmem [shape: bf16[128,128], index: 3, kind: input, shape index: {}]   ;;  %s442_s0 = inlined_call_operand.vmem [shape: f32[8,128], index: 0, kind: input, shape index: {}]   ;;  %s443_s2 = inlined_call_operand.vmem [shape: f32[1,128], index: 2, kind: input, shape index: {}]   ;;  %s444_s4 = inlined_call_operand.vmem [shape: f32[1,128], index: 4, kind: input, shape index: {}]   ;;  %s445_s5 = inlined_call_operand.vmem [shape: f32[8,128], index: 5, kind: output, shape index: {}]  }
   0x1   :  { %290 = vmatprep.subr.bf16.mxu0 %v348_v0  ;;  %v332_v1 = vld [vmem:[%s440_s1] sm:$0xff]   ;;  %306 = vmatprep.mubr.msk.bf16.mxu0 %vm349_vm0, %v348_v0  ;;  %v333_v2 = vld [vmem:[%s440_s1 + $0x8] sm:$0xff]   ;;  %v334_v3 = vld [vmem:[%s440_s1 + $0x10] sm:$0xff]  }
   0x2   :  { %310 = vmatprep.subr.bf16.mxu1 %v348_v0  ;;  %326 = vmatprep.mubr.msk.bf16.mxu1 %vm349_vm0, %v348_v0  ;;  %v340_v4 = vld [vmem:[%s441_s3] sm:$0xff]   ;;  %v335_v5 = vld [vmem:[%s440_s1 + $0x18] sm:$0xff]   ;;  %v341_v6 = vld [vmem:[%s441_s3 + $0x8] sm:$0xff]  }
   0x3   :  { %291 = vmatpush3.bf16.msra.mxu0 %v332_v1  ;;  %311 = vmatpush3.bf16.msra.mxu1 %v340_v4  ;;  %v336_v7 = vld [vmem:[%s440_s1 + $0x20] sm:$0xff]   ;;  %v342_v8 = vld [vmem:[%s441_s3 + $0x10] sm:$0xff]   ;;  %v337_v9 = vld [vmem:[%s440_s1 + $0x28] sm:$0xff]  }
   0x4   :  { %292 = vmatprep.subr.bf16.mxu0 %v348_v0  ;;  %312 = vmatprep.subr.bf16.mxu1 %v348_v0  ;;  %v343_v10 = vld [vmem:[%s441_s3 + $0x18] sm:$0xff]   ;;  %v338_v11 = vld [vmem:[%s440_s1 + $0x30] sm:$0xff]   ;;  %v344_v12 = vld [vmem:[%s441_s3 + $0x20] sm:$0xff]  }
   0x5   :  { %v339_v13 = vld [vmem:[%s440_s1 + $0x38] sm:$0xff]   ;;  %v21_v14 = vld [vmem:[%s442_s0] sm:$0xff]  ;;  %v345_v15 = vld [vmem:[%s441_s3 + $0x28] sm:$0xff]  }
   0x6   :  { %v22_v16 = vpack.c.bf16 %v21_v14, %v21_v14  ;;  %v346_v17 = vld [vmem:[%s441_s3 + $0x30] sm:$0xff]   ;;  %v347_v18 = vld [vmem:[%s441_s3 + $0x38] sm:$0xff]   ;;  %v254_v19 = vld [vmem:[%s443_s2] ss:$0 sm:$0xff] }
   0x7   :  { %293 = vmatpush3.bf16.msra.mxu0 %v333_v2  ;;  %313 = vmatpush3.bf16.msra.mxu1 %v341_v6  ;;  %v263_v27 = vld [vmem:[%s444_s4] ss:$0 sm:$0xff] }
   0x8   :  { %294 = vmatprep.subr.bf16.mxu0 %v348_v0  ;;  %314 = vmatprep.subr.bf16.mxu1 %v348_v0 }
   0xb   :  { %295 = vmatpush3.bf16.msra.mxu0 %v334_v3  ;;  %315 = vmatpush3.bf16.msra.mxu1 %v342_v8 }
   0xc   :  { %296 = vmatprep.subr.bf16.mxu0 %v348_v0  ;;  %316 = vmatprep.subr.bf16.mxu1 %v348_v0 }
   0xf   :  { %297 = vmatpush3.bf16.msra.mxu0 %v335_v5  ;;  %317 = vmatpush3.bf16.msra.mxu1 %v343_v10 }
  0x10   :  { %298 = vmatprep.subr.bf16.mxu0 %v348_v0  ;;  %318 = vmatprep.subr.bf16.mxu1 %v348_v0 }
  0x13   :  { %299 = vmatpush3.bf16.msra.mxu0 %v336_v7  ;;  %319 = vmatpush3.bf16.msra.mxu1 %v344_v12 }
  0x14   :  { %300 = vmatprep.subr.bf16.mxu0 %v348_v0  ;;  %320 = vmatprep.subr.bf16.mxu1 %v348_v0 }
  0x17   :  { %301 = vmatpush3.bf16.msra.mxu0 %v337_v9  ;;  %321 = vmatpush3.bf16.msra.mxu1 %v345_v15 }
  0x18   :  { %302 = vmatprep.subr.bf16.mxu0 %v348_v0  ;;  %322 = vmatprep.subr.bf16.mxu1 %v348_v0 }
  0x1b   :  { %303 = vmatpush3.bf16.msra.mxu0 %v338_v11  ;;  %323 = vmatpush3.bf16.msra.mxu1 %v346_v17 }
  0x1c   :  { %304 = vmatprep.subr.bf16.mxu0 %v348_v0  ;;  %324 = vmatprep.subr.bf16.mxu1 %v348_v0 }
  0x1f   :  { %305 = vmatpush3.bf16.msra.mxu0 %v339_v13  ;;  %325 = vmatpush3.bf16.msra.mxu1 %v347_v18 }
  0x22   :  { %307 = vmatmul.mubr.bf16.vlgmr.msra.gmra.mrb[0].mxu0 %v22_v16 }
  0xf5   :  { %v128_v20 = vpop.f32.mrb[0].mxu0 }
  0xf6   :  { %v129_v21 = vadd.f32 %v254_v19, %v128_v20  ;;  %v308_v22 = vpop.f32.mrb[1].mxu0 }
  0xf7   :  { %v131_v23 = vpop.f32.mrb[2].mxu0 }
  0xf8   :  { %v134_v24 = vmax.f32 %v129_v21, 0.0  ;;  %v309_v25 = vpop.f32.mrb[3].mxu0 }
  0xfa   :  { %v135_v26 = vpack.c.bf16 %v134_v24, %v134_v24 }
  0xfc   :  { %327 = vmatmul.mubr.bf16.vlgmr.msra.gmra.mrb[0].mxu1 %v135_v26 }
 0x1cf   :  { %v241_v28 = vpop.f32.mrb[0].mxu1 }
 0x1d0   :  { %v242_v29 = vadd.f32 %v263_v27, %v241_v28  ;;  %v328_v30 = vpop.f32.mrb[1].mxu1 }
 0x1d1   :  { %v244_v31 = vpop.f32.mrb[2].mxu1 }
 0x1d2   :  { %v247_v32 = vadd.f32 %v242_v29, %v134_v24  ;;  %v329_v33 = vpop.f32.mrb[3].mxu1 }
 0x1d4   :  { %v248_v34 = vmax.f32 %v247_v32, 0.0 }
 0x1d6   :  { %249 = vst [vmem:[%s445_s5] sm:$0xff] %v248_v34 }

// kernel: forward_pallas.18
= control target key start
LH: loop header
LB: loop body
LE: loop exit
PB: predicated region body
PF: predicated region fallthrough
CT: control target
= control target key end

     0   :  { %v365_v0 = vmov 0.0   ;;  %vm366_vm0 = vmmov 0   ;;  %s473_s3 = inlined_call_operand.vmem [shape: bf16[128,128], index: 3, kind: input, shape index: {}]   ;;  %s474_s5 = inlined_call_operand.vmem [shape: bf16[128,128], index: 5, kind: input, shape index: {}]   ;;  %s475_s2 = inlined_call_operand.vmem [shape: f32[8,128], index: 2, kind: input, shape index: {}]   ;;  %s476_s4 = inlined_call_operand.vmem [shape: f32[1,128], index: 4, kind: input, shape index: {}]   ;;  %s477_s6 = inlined_call_operand.vmem [shape: f32[1,128], index: 6, kind: input, shape index: {}]   ;;  %s478_s0 = inlined_call_operand.vmem [shape: f32[8,128], index: 0, kind: input, shape index: {}]   ;;  %s479_s1 = inlined_call_operand.vmem [shape: f32[8,128], index: 1, kind: input, shape index: {}]   ;;  %s480_s7 = inlined_call_operand.vmem [shape: f32[8,128], index: 7, kind: output, shape index: {}]  }
   0x1   :  { %305 = vmatprep.subr.bf16.mxu0 %v365_v0  ;;  %325 = vmatprep.subr.bf16.mxu1 %v365_v0  ;;  %v347_v1 = vld [vmem:[%s473_s3] sm:$0xff]   ;;  %v349_v3 = vld [vmem:[%s473_s3 + $0x8] sm:$0xff]   ;;  %v351_v5 = vld [vmem:[%s473_s3 + $0x10] sm:$0xff]  }
   0x2   :  { %v348_v2 = vld [vmem:[%s474_s5] sm:$0xff]   ;;  %321 = vmatprep.mubr.msk.bf16.mxu0 %vm366_vm0, %v365_v0  ;;  %341 = vmatprep.mubr.msk.bf16.mxu1 %vm366_vm0, %v365_v0  ;;  %v350_v4 = vld [vmem:[%s474_s5 + $0x8] sm:$0xff]   ;;  %v352_v6 = vld [vmem:[%s474_s5 + $0x10] sm:$0xff]  }
   0x3   :  { %306 = vmatpush3.bf16.msra.mxu0 %v347_v1  ;;  %326 = vmatpush3.bf16.msra.mxu1 %v348_v2  ;;  %v353_v7 = vld [vmem:[%s473_s3 + $0x18] sm:$0xff]   ;;  %v355_v9 = vld [vmem:[%s473_s3 + $0x20] sm:$0xff]   ;;  %v357_v11 = vld [vmem:[%s473_s3 + $0x28] sm:$0xff]  }
   0x4   :  { %307 = vmatprep.subr.bf16.mxu0 %v365_v0  ;;  %327 = vmatprep.subr.bf16.mxu1 %v365_v0  ;;  %v354_v8 = vld [vmem:[%s474_s5 + $0x18] sm:$0xff]   ;;  %v356_v10 = vld [vmem:[%s474_s5 + $0x20] sm:$0xff]   ;;  %v358_v12 = vld [vmem:[%s474_s5 + $0x28] sm:$0xff]  }
   0x5   :  { %v359_v13 = vld [vmem:[%s473_s3 + $0x30] sm:$0xff]   ;;  %v361_v15 = vld [vmem:[%s473_s3 + $0x38] sm:$0xff]   ;;  %v27_v16 = vld [vmem:[%s475_s2] sm:$0xff] }
   0x6   :  { %v360_v14 = vld [vmem:[%s474_s5 + $0x30] sm:$0xff]   ;;  %v362_v17 = vld [vmem:[%s474_s5 + $0x38] sm:$0xff]   ;;  %v28_v18 = vpack.c.bf16 %v27_v16, %v27_v16  ;;  %v269_v19 = vld [vmem:[%s476_s4] ss:$0 sm:$0xff] }
   0x7   :  { %308 = vmatpush3.bf16.msra.mxu0 %v349_v3  ;;  %328 = vmatpush3.bf16.msra.mxu1 %v350_v4  ;;  %v278_v20 = vld [vmem:[%s477_s6] ss:$0 sm:$0xff] }
   0x8   :  { %309 = vmatprep.subr.bf16.mxu0 %v365_v0  ;;  %329 = vmatprep.subr.bf16.mxu1 %v365_v0  ;;  %v257_v22 = vld [vmem:[%s478_s0] sm:$0xff] }
   0x9   :  { %v259_v25 = vld [vmem:[%s479_s1] sm:$0xff] }
   0xb   :  { %310 = vmatpush3.bf16.msra.mxu0 %v351_v5  ;;  %330 = vmatpush3.bf16.msra.mxu1 %v352_v6 }
   0xc   :  { %311 = vmatprep.subr.bf16.mxu0 %v365_v0  ;;  %331 = vmatprep.subr.bf16.mxu1 %v365_v0 }
   0xf   :  { %312 = vmatpush3.bf16.msra.mxu0 %v353_v7  ;;  %332 = vmatpush3.bf16.msra.mxu1 %v354_v8 }
  0x10   :  { %313 = vmatprep.subr.bf16.mxu0 %v365_v0  ;;  %333 = vmatprep.subr.bf16.mxu1 %v365_v0 }
  0x13   :  { %314 = vmatpush3.bf16.msra.mxu0 %v355_v9  ;;  %334 = vmatpush3.bf16.msra.mxu1 %v356_v10 }
  0x14   :  { %315 = vmatprep.subr.bf16.mxu0 %v365_v0  ;;  %335 = vmatprep.subr.bf16.mxu1 %v365_v0 }
  0x17   :  { %316 = vmatpush3.bf16.msra.mxu0 %v357_v11  ;;  %336 = vmatpush3.bf16.msra.mxu1 %v358_v12 }
  0x18   :  { %317 = vmatprep.subr.bf16.mxu0 %v365_v0  ;;  %337 = vmatprep.subr.bf16.mxu1 %v365_v0 }
  0x1b   :  { %318 = vmatpush3.bf16.msra.mxu0 %v359_v13  ;;  %338 = vmatpush3.bf16.msra.mxu1 %v360_v14 }
  0x1c   :  { %319 = vmatprep.subr.bf16.mxu0 %v365_v0  ;;  %339 = vmatprep.subr.bf16.mxu1 %v365_v0 }
  0x1f   :  { %320 = vmatpush3.bf16.msra.mxu0 %v361_v15  ;;  %340 = vmatpush3.bf16.msra.mxu1 %v362_v17 }
  0x22   :  { %322 = vmatmul.mubr.bf16.vlgmr.msra.gmra.mrb[0].mxu0 %v28_v18  ;;  %342 = vmatmul.mubr.bf16.vlgmr.msra.gmra.mrb[0].mxu1 %v28_v18 }
  0xf5   :  { %v134_v21 = vpop.f32.mrb[0].mxu0  ;;  %v245_v24 = vpop.f32.mrb[0].mxu1 }
  0xf6   :  { %v135_v23 = vadd.f32 %v269_v19, %v134_v21  ;;  %v323_v26 = vpop.f32.mrb[1].mxu0  ;;  %v246_v27 = vadd.f32 %v278_v20, %v245_v24  ;;  %v343_v29 = vpop.f32.mrb[1].mxu1 }
  0xf7   :  { %v137_v28 = vpop.f32.mrb[2].mxu0  ;;  %v248_v31 = vpop.f32.mrb[2].mxu1 }
  0xf8   :  { %v258_v30 = vmul.f32 %v257_v22, %v135_v23  ;;  %251 = vadd.xlane.f32.xlu0 %v135_v23  ;;  %v324_v32 = vpop.f32.mrb[3].mxu0  ;;  %v260_v33 = vmul.f32 %v259_v25, %v246_v27  ;;  %v344_v34 = vpop.f32.mrb[3].mxu1 }
  0xfa   :  { %v261_v35 = vadd.f32 %v260_v33, %v258_v30 }
  0xfc   :  { %253 = vadd.xlane.f32.xlu0 %v246_v27 }
 0x185   :  { %v252_v36 = vpop.xlane.xlu0 %251 }
 0x189   :  { %v254_v37 = vpop.xlane.xlu0 %253 }
 0x18a   :  { %v255_v38 = vadd.f32 %v254_v37, %v252_v36 }
 0x18c   :  { %v256_v39 = vadd.f32 1e-10, %v255_v38 }
 0x18e   :  { %363 = vrcp.f32 %v256_v39 }
 0x198   :  { %v364_v40 = vpop.eup %363 }
 0x199   :  { %v263_v41 = vmul.f32 %v364_v40, %v261_v35 }
 0x19b   :  { %264 = vst [vmem:[%s480_s7] sm:$0xff] %v263_v41 }

</bundles_post_ra>
